<compile_context>
chip_gen: v5e
topology: v5e:2x2
jax: 0.10.0
libtpu: 0.0.40
codegen_flags: <defaults>
</compile_context>

<pallas_src>
import functools

import jax
import jax.numpy as jnp
from jax import lax
from jax.experimental import pallas as pl
from jax.experimental.pallas import tpu as pltpu


def _cparams(sem):
    return pltpu.CompilerParams(dimension_semantics=sem,
                                vmem_limit_bytes=48 * 1024 * 1024)


# ----------------------------------------------------------------------------
# Kernel 1: conv1 = 3x3 conv (stride 1, pad 1) + bias + ReLU
# ----------------------------------------------------------------------------
# Input is the image padded by 2 rows top/bottom and flattened to (C, (H+4)*W).
# Tap (kh, kw) of the conv is then a *contiguous* slice of length N starting at
# (kh+1)*W + (kw-1); row-boundary spillover only happens at columns that must
# be zero anyway and is removed with a precomputed column mask.

def _conv1_3x3_kernel(H, W, x_ref, m_ref, w_ref, b_ref, o_ref):
    N = H * W
    C = o_ref.shape[0]
    masks = m_ref[...].astype(jnp.float32)          # (2, N): [left, right] masks
    acc = jnp.zeros((C, N), jnp.float32)
    for kh in range(3):
        for kw in range(3):
            start = (kh + 1) * W + (kw - 1)
            patch = x_ref[:, pl.ds(start, N)].astype(jnp.float32)   # (C, N)
            if kw == 0:
                patch = patch * masks[0:1, :]
            elif kw == 2:
                patch = patch * masks[1:2, :]
            acc = acc + jnp.dot(w_ref[kh * 3 + kw], patch,
                                preferred_element_type=jnp.float32)
    o_ref[...] = jnp.maximum(acc + b_ref[...], 0.0).astype(o_ref.dtype)


def conv1_3x3_relu(x, w1tap, b1, col_masks, out_dtype=jnp.bfloat16):
    B, C, H, W = x.shape
    N = H * W
    L = (H + 4) * W
    xp = jnp.pad(x, ((0, 0), (0, 0), (2, 2), (0, 0))).reshape(B, C, L)
    return pl.pallas_call(
        functools.partial(_conv1_3x3_kernel, H, W),
        out_shape=jax.ShapeDtypeStruct((B, C, N), out_dtype),
        grid=(B,),
        in_specs=[
            pl.BlockSpec((None, C, L), lambda i: (i, 0, 0)),
            pl.BlockSpec((2, N), lambda i: (0, 0)),
            pl.BlockSpec((9, C, C), lambda i: (0, 0, 0)),
            pl.BlockSpec((C, 1), lambda i: (0, 0)),
        ],
        out_specs=pl.BlockSpec((None, C, N), lambda i: (i, 0, 0)),
        compiler_params=_cparams(("parallel",)),
    )(xp, col_masks, w1tap, b1)


# ----------------------------------------------------------------------------
# Kernel 2: fused PAM_Module (Q/K/V projection + linear attention + residual)
# ----------------------------------------------------------------------------

def _pam_kernel(eps, dp, x_ref, w_ref, b_ref, gamma_ref, o_ref):
    x_bf = x_ref[...]                                   # (C, N) bf16
    x = x_bf.astype(jnp.float32)
    n = x.shape[-1]
    # One stacked projection: rows [0:dp)=Q, [dp:2dp)=K, [2dp:)=V.
    qkv = jnp.dot(w_ref[...], x_bf,
                  preferred_element_type=jnp.float32) + b_ref[...]
    Q = qkv[0:dp]                                       # (dp, N)  (zero-padded rows)
    K = qkv[dp:2 * dp]                                  # (dp, N)
    V = qkv[2 * dp:]                                    # (C, N)

    # l2-norm over the channel dim (per spatial location); eps avoids 0/0.
    Qn = Q * lax.rsqrt(jnp.sum(Q * Q, axis=0, keepdims=True) + 1e-12)
    Kn = K * lax.rsqrt(jnp.sum(K * K, axis=0, keepdims=True) + 1e-12)

    k_sum = jnp.sum(Kn, axis=1, keepdims=True) + eps                    # (dp, 1)
    tailor = pl.reciprocal(n + jnp.sum(Qn * k_sum, axis=0, keepdims=True),
                           approx=True)                                 # (1, N)
    value_sum = jnp.sum(V, axis=1, keepdims=True)                       # (C, 1)
    # matrix^T[c, m] = sum_n Kn[m, n] * V[c, n]
    mat_t = lax.dot_general(V, Kn, (((1,), (1,)), ((), ())),
                            preferred_element_type=jnp.float32)         # (C, dp)
    matrix_sum = value_sum + jnp.dot(mat_t, Qn,
                                     preferred_element_type=jnp.float32)  # (C, N)
    gamma = gamma_ref[0, 0]
    o_ref[...] = (x + gamma * (matrix_sum * tailor)).astype(o_ref.dtype)


def pam_module(x1, q, eps=1e-6):
    B, C, N = x1.shape
    Wt = q["w_qkv"].shape[0]
    dp = (Wt - C) // 2
    return pl.pallas_call(
        functools.partial(_pam_kernel, eps, dp),
        out_shape=jax.ShapeDtypeStruct((B, C, N), x1.dtype),
        grid=(B,),
        in_specs=[
            pl.BlockSpec((None, C, N), lambda i: (i, 0, 0)),
            pl.BlockSpec((Wt, C), lambda i: (0, 0)),
            pl.BlockSpec((Wt, 1), lambda i: (0, 0)),
            pl.BlockSpec(memory_space=pltpu.MemorySpace.SMEM),
        ],
        out_specs=pl.BlockSpec((None, C, N), lambda i: (i, 0, 0)),
        compiler_params=_cparams(("parallel",)),
    )(x1, q["w_qkv"], q["b_qkv"], q["gamma"])


# ----------------------------------------------------------------------------
# Kernel 3: fully fused PSA_s (spatial_pool + channel_pool)
# ----------------------------------------------------------------------------

def _psa_kernel(Cp, x_ref, wr_ref, wl_ref, wu1_ref, bu1_ref, lnw_ref, lnb_ref,
                wu2_ref, bu2_ref, o_ref):
    x_bf = x_ref[...]                                    # (C, N) bf16
    x = x_bf.astype(jnp.float32)

    # ---- spatial_pool -------------------------------------------------------
    # Stacked conv_v_right (rows 0:Cp) + conv_q_right (row Cp), both bias-free.
    right = jnp.dot(wr_ref[...], x_bf,
                    preferred_element_type=jnp.float32)  # (Cp+1, N)
    input_x = right[0:Cp]                                # (Cp, N)
    mask = right[Cp:Cp + 1]                              # (1, N)
    mask = mask - jnp.max(mask, axis=-1, keepdims=True)
    e = jnp.exp(mask)
    sm = e * pl.reciprocal(jnp.sum(e, axis=-1, keepdims=True), approx=True)
    ctx = jnp.sum(input_x * sm, axis=-1, keepdims=True)  # (Cp, 1) context

    # conv_up: 1x1 -> LayerNorm([Cp//4,1,1]) -> ReLU -> 1x1 (kept in-kernel)
    h = jnp.dot(wu1_ref[...], ctx,
                preferred_element_type=jnp.float32) + bu1_ref[...]     # (Cp4, 1)
    mu = jnp.mean(h, axis=0, keepdims=True)
    var = jnp.mean((h - mu) * (h - mu), axis=0, keepdims=True)
    h = (h - mu) * lax.rsqrt(var + 1e-5) * lnw_ref[...] + lnb_ref[...]
    h = jnp.maximum(h, 0.0)
    logits = jnp.dot(wu2_ref[...], h,
                     preferred_element_type=jnp.float32) + bu2_ref[...]  # (C, 1)
    gate_ch = pl.reciprocal(1.0 + jnp.exp(-logits), approx=True)
    out_sp = x * gate_ch                                                 # (C, N)

    # ---- channel_pool -------------------------------------------------------
    # Stacked conv_q_left (rows 0:Cp) + conv_v_left (rows Cp:2Cp), bias-free.
    left = jnp.dot(wl_ref[...], out_sp.astype(jnp.bfloat16),
                   preferred_element_type=jnp.float32)   # (2Cp, N)
    g = left[0:Cp]
    theta = left[Cp:2 * Cp]
    avg = jnp.mean(g, axis=-1, keepdims=True)            # (Cp, 1) avg-pool
    theta = theta - jnp.max(theta, axis=-1, keepdims=True)
    e2 = jnp.exp(theta)
    sm2 = e2 * pl.reciprocal(jnp.sum(e2, axis=-1, keepdims=True), approx=True)
    ctx_sp = jnp.sum(avg * sm2, axis=0, keepdims=True)   # (1, N)
    gate_sp = pl.reciprocal(1.0 + jnp.exp(-ctx_sp), approx=True)
    o_ref[...] = (out_sp * gate_sp).astype(o_ref.dtype)


def psa_module(x1, q):
    B, C, N = x1.shape
    Cp = C // 2
    Cp4 = Cp // 4
    return pl.pallas_call(
        functools.partial(_psa_kernel, Cp),
        out_shape=jax.ShapeDtypeStruct((B, C, N), x1.dtype),
        grid=(B,),
        in_specs=[
            pl.BlockSpec((None, C, N), lambda i: (i, 0, 0)),
            pl.BlockSpec((Cp + 1, C), lambda i: (0, 0)),
            pl.BlockSpec((2 * Cp, C), lambda i: (0, 0)),
            pl.BlockSpec((Cp4, Cp), lambda i: (0, 0)),
            pl.BlockSpec((Cp4, 1), lambda i: (0, 0)),
            pl.BlockSpec((Cp4, 1), lambda i: (0, 0)),
            pl.BlockSpec((Cp4, 1), lambda i: (0, 0)),
            pl.BlockSpec((C, Cp4), lambda i: (0, 0)),
            pl.BlockSpec((C, 1), lambda i: (0, 0)),
        ],
        out_specs=pl.BlockSpec((None, C, N), lambda i: (i, 0, 0)),
        compiler_params=_cparams(("parallel",)),
    )(x1, q["w_right"], q["w_left"], q["w_up1"], q["b_up1"],
      q["ln_w"], q["ln_b"], q["w_up2"], q["b_up2"])


# ----------------------------------------------------------------------------
# Kernel 4: fused epilogue  conv2P(pam) + conv2C(psa) -> add -> conv3 -> ReLU
# ----------------------------------------------------------------------------

def _epilogue_kernel(pam_ref, psa_ref, w2p_ref, b2p_ref, w2c_ref, b2c_ref,
                     w3_ref, b3_ref, o_ref):
    bp = jnp.maximum(
        jnp.dot(w2p_ref[...], pam_ref[...],
                preferred_element_type=jnp.float32) + b2p_ref[...], 0.0)
    bc = jnp.maximum(
        jnp.dot(w2c_ref[...], psa_ref[...],
                preferred_element_type=jnp.float32) + b2c_ref[...], 0.0)
    y = (bp + bc).astype(jnp.bfloat16)
    out = jnp.dot(w3_ref[...], y,
                  preferred_element_type=jnp.float32) + b3_ref[...]
    o_ref[...] = jnp.maximum(out, 0.0).astype(o_ref.dtype)


def _pick_tile(N, target=2048):
    if N <= target:
        return N
    for tn in (2048, 1024, 512, 256, 128):
        if N % tn == 0:
            return tn
    return N


def epilogue(pam_out, psa_out, q, out_dtype):
    B, C, N = pam_out.shape
    TN = _pick_tile(N)
    nt = N // TN
    return pl.pallas_call(
        _epilogue_kernel,
        out_shape=jax.ShapeDtypeStruct((B, C, N), out_dtype),
        grid=(B, nt),
        in_specs=[
            pl.BlockSpec((None, C, TN), lambda b, n: (b, 0, n)),
            pl.BlockSpec((None, C, TN), lambda b, n: (b, 0, n)),
            pl.BlockSpec((C, C), lambda b, n: (0, 0)),
            pl.BlockSpec((C, 1), lambda b, n: (0, 0)),
            pl.BlockSpec((C, C), lambda b, n: (0, 0)),
            pl.BlockSpec((C, 1), lambda b, n: (0, 0)),
            pl.BlockSpec((C, C), lambda b, n: (0, 0)),
            pl.BlockSpec((C, 1), lambda b, n: (0, 0)),
        ],
        out_specs=pl.BlockSpec((None, C, TN), lambda b, n: (b, 0, n)),
        compiler_params=_cparams(("parallel", "parallel")),
    )(pam_out, psa_out, q["w2p"], q["b2p"], q["w2c"], q["b2c"],
      q["w3"], q["b3"])


# ----------------------------------------------------------------------------
# Full layer
# ----------------------------------------------------------------------------

def pam_cssam_layer(x, q):
    B, C, H, W = x.shape
    N = H * W
    cols = jnp.arange(N, dtype=jnp.int32) % W
    col_masks = jnp.stack([(cols != 0), (cols != W - 1)]).astype(jnp.float32)

    x1 = conv1_3x3_relu(x, q["w1"], q["b1"], col_masks)   # (B, C, N) bf16
    pam_out = pam_module(x1, q)                           # (B, C, N) bf16
    psa_out = psa_module(x1, q)                           # (B, C, N) bf16
    out = epilogue(pam_out, psa_out, q, x.dtype)          # (B, C, N) f32
    return out.reshape(B, C, H, W)


# ----------------------------------------------------------------------------
# Parameters (torch-shaped init, then converted to kernel-ready layout)
# ----------------------------------------------------------------------------

def init_torch_params(key, C):
    d = C // 8        # PAM scale = 8
    Cp = C // 2       # PSA inter_planes
    Cp4 = Cp // 4     # PSA bottleneck (ratio = 4)
    ks = jax.random.split(key, 22)

    def w(k, co, ci, kk=1):
        fan = ci * kk * kk
        return jax.random.normal(k, (co, ci, kk, kk), jnp.float32) / jnp.sqrt(fan)

    def b(k, co):
        return jax.random.normal(k, (co,), jnp.float32) * 0.05

    return dict(
        w1=w(ks[0], C, C, 3), b1=b(ks[1], C),
        wq=w(ks[2], d, C), bq=b(ks[3], d),
        wk=w(ks[4], d, C), bk=b(ks[5], d),
        wv=w(ks[6], C, C), bv=b(ks[7], C),
        gamma=jnp.float32(0.1),   # torch inits to 0; nonzero exercises the path
        w_qr=w(ks[8], 1, C), w_vr=w(ks[9], Cp, C),
        w_ql=w(ks[10], Cp, C), w_vl=w(ks[11], Cp, C),
        w_up1=w(ks[12], Cp4, Cp), b_up1=b(ks[13], Cp4),
        ln_w=jnp.ones((Cp4,), jnp.float32), ln_b=jnp.zeros((Cp4,), jnp.float32),
        w_up2=w(ks[14], C, Cp4), b_up2=b(ks[15], C),
        w2p=w(ks[16], C, C), b2p=b(ks[17], C),
        w2c=w(ks[18], C, C), b2c=b(ks[19], C),
        w3=w(ks[20], C, C), b3=b(ks[21], C),
    )


def prepare_params(p, C):
    d = C // 8
    dp = ((d + 7) // 8) * 8            # pad query/key channels to a sublane tile
    Cp = C // 2
    Cp4 = Cp // 4
    bf = jnp.bfloat16
    q = {}
    # conv1 weight -> (9, C, C), tap order kh*3+kw
    q["w1"] = jnp.transpose(p["w1"], (2, 3, 0, 1)).reshape(9, C, C)
    q["b1"] = p["b1"].reshape(C, 1)
    # PAM: stacked & zero-padded Q/K/V projection (padding is mathematically exact)
    wq = jnp.zeros((dp, C), jnp.float32).at[:d].set(p["wq"].reshape(d, C))
    wk = jnp.zeros((dp, C), jnp.float32).at[:d].set(p["wk"].reshape(d, C))
    bq = jnp.zeros((dp,), jnp.float32).at[:d].set(p["bq"])
    bk = jnp.zeros((dp,), jnp.float32).at[:d].set(p["bk"])
    q["w_qkv"] = jnp.concatenate(
        [wq, wk, p["wv"].reshape(C, C)], axis=0).astype(bf)
    q["b_qkv"] = jnp.concatenate([bq, bk, p["bv"]], axis=0).reshape(2 * dp + C, 1)
    q["gamma"] = jnp.reshape(p["gamma"], (1, 1))
    # PSA: stacked right (v_right, q_right) and left (q_left, v_left) projections
    q["w_right"] = jnp.concatenate(
        [p["w_vr"].reshape(Cp, C), p["w_qr"].reshape(1, C)], axis=0).astype(bf)
    q["w_left"] = jnp.concatenate(
        [p["w_ql"].reshape(Cp, C), p["w_vl"].reshape(Cp, C)], axis=0).astype(bf)
    q["w_up1"] = p["w_up1"].reshape(Cp4, Cp)
    q["b_up1"] = p["b_up1"].reshape(Cp4, 1)
    q["ln_w"] = p["ln_w"].reshape(Cp4, 1)
    q["ln_b"] = p["ln_b"].reshape(Cp4, 1)
    q["w_up2"] = p["w_up2"].reshape(C, Cp4)
    q["b_up2"] = p["b_up2"].reshape(C, 1)
    # epilogue 1x1 convs
    q["w2p"] = p["w2p"].reshape(C, C).astype(bf)
    q["b2p"] = p["b2p"].reshape(C, 1)
    q["w2c"] = p["w2c"].reshape(C, C).astype(bf)
    q["b2c"] = p["b2c"].reshape(C, 1)
    q["w3"] = p["w3"].reshape(C, C).astype(bf)
    q["b3"] = p["b3"].reshape(C, 1)
    return q


if __name__ == "__main__":
    # in_ch must be divisible by 8 (PAM scale and the PSA bottleneck ratio).
    B, C, H, W = 2, 16, 16, 16
    key = jax.random.PRNGKey(0)
    kx, kp = jax.random.split(key)
    x = jax.random.normal(kx, (B, C, H, W), jnp.float32)
    params = prepare_params(init_torch_params(kp, C), C)

    fwd = jax.jit(lambda inp: pam_cssam_layer(inp, params))
    out = fwd(x)
    jax.block_until_ready(out)

    assert out.shape == (B, C, H, W), out.shape
    assert bool(jnp.all(jnp.isfinite(out)))
    print("KERNEL_OK")
</pallas_src>

<mosaic_0001>
module attributes {stable_mosaic.version = 11 : i64} {
  func.func @_conv1_3x3_kernel(%arg0: i32, %arg1: memref<1x16x320xf32, #tpu.memory_space<vmem>>, %arg2: memref<2x256xf32, #tpu.memory_space<vmem>>, %arg3: memref<9x16x16xf32, #tpu.memory_space<vmem>>, %arg4: memref<16x1xf32, #tpu.memory_space<vmem>>, %arg5: memref<1x16x256xbf16, #tpu.memory_space<vmem>>) attributes {dimension_semantics = [#tpu.dimension_semantics<parallel>], iteration_bounds = array<i64: 2>, scalar_prefetch = 0 : i64, scratch_operands = 0 : i64, tpu.core_type = #tpu.core_type<tc>, window_params = [{transform_indices = @transform_0, window_bounds = array<i64: 1, 16, 320>}, {pipeline_mode = #tpu.pipeline_mode<synchronous>, transform_indices = @transform_1, window_bounds = array<i64: 2, 256>}, {pipeline_mode = #tpu.pipeline_mode<synchronous>, transform_indices = @transform_2, window_bounds = array<i64: 9, 16, 16>}, {pipeline_mode = #tpu.pipeline_mode<synchronous>, transform_indices = @transform_3, window_bounds = array<i64: 16, 1>}, {transform_indices = @transform_4, window_bounds = array<i64: 1, 16, 256>}]} {
    %c0 = arith.constant 0 : index
    %c0_0 = arith.constant 0 : index
    %0 = vector.load %arg2[%c0, %c0_0] : memref<2x256xf32, #tpu.memory_space<vmem>>, vector<2x256xf32>
    %cst = arith.constant 0.000000e+00 : f32
    %1 = vector.broadcast %cst : f32 to vector<16x256xf32>
    %c0_1 = arith.constant 0 : index
    %c0_2 = arith.constant 0 : index
    %c15 = arith.constant 15 : index
    %2 = vector.load %arg1[%c0_1, %c0_2, %c15] : memref<1x16x320xf32, #tpu.memory_space<vmem>>, vector<1x16x256xf32>
    %3 = vector.shape_cast %2 : vector<1x16x256xf32> to vector<16x256xf32>
    %4 = vector.extract_strided_slice %0 {offsets = [0, 0], sizes = [1, 256], strides = [1, 1]} : vector<2x256xf32> to vector<1x256xf32>
    %5 = vector.broadcast %4 : vector<1x256xf32> to vector<16x256xf32>
    %6 = arith.mulf %3, %5 : vector<16x256xf32>
    %c0_3 = arith.constant 0 : index
    %c0_4 = arith.constant 0 : index
    %c0_5 = arith.constant 0 : index
    %7 = vector.load %arg3[%c0_3, %c0_4, %c0_5] : memref<9x16x16xf32, #tpu.memory_space<vmem>>, vector<1x16x16xf32>
    %8 = vector.shape_cast %7 : vector<1x16x16xf32> to vector<16x16xf32>
    %cst_6 = arith.constant dense<0.000000e+00> : vector<16x256xf32>
    %9 = tpu.matmul %8, %6, %cst_6 {dimension_numbers = #tpu.dot_dimension_numbers<[1], [0], [0], [1], [0, 0, 1, 1], [], []>} : vector<16x16xf32>, vector<16x256xf32>, vector<16x256xf32> -> vector<16x256xf32>
    %10 = arith.addf %1, %9 : vector<16x256xf32>
    %c0_7 = arith.constant 0 : index
    %c0_8 = arith.constant 0 : index
    %c16 = arith.constant 16 : index
    %11 = vector.load %arg1[%c0_7, %c0_8, %c16] : memref<1x16x320xf32, #tpu.memory_space<vmem>>, vector<1x16x256xf32>
    %12 = vector.shape_cast %11 : vector<1x16x256xf32> to vector<16x256xf32>
    %c1 = arith.constant 1 : index
    %c0_9 = arith.constant 0 : index
    %c0_10 = arith.constant 0 : index
    %13 = vector.load %arg3[%c1, %c0_9, %c0_10] : memref<9x16x16xf32, #tpu.memory_space<vmem>>, vector<1x16x16xf32>
    %14 = vector.shape_cast %13 : vector<1x16x16xf32> to vector<16x16xf32>
    %cst_11 = arith.constant dense<0.000000e+00> : vector<16x256xf32>
    %15 = tpu.matmul %14, %12, %cst_11 {dimension_numbers = #tpu.dot_dimension_numbers<[1], [0], [0], [1], [0, 0, 1, 1], [], []>} : vector<16x16xf32>, vector<16x256xf32>, vector<16x256xf32> -> vector<16x256xf32>
    %16 = arith.addf %10, %15 : vector<16x256xf32>
    %c0_12 = arith.constant 0 : index
    %c0_13 = arith.constant 0 : index
    %c17 = arith.constant 17 : index
    %17 = vector.load %arg1[%c0_12, %c0_13, %c17] : memref<1x16x320xf32, #tpu.memory_space<vmem>>, vector<1x16x256xf32>
    %18 = vector.shape_cast %17 : vector<1x16x256xf32> to vector<16x256xf32>
    %19 = vector.extract_strided_slice %0 {offsets = [1, 0], sizes = [1, 256], strides = [1, 1]} : vector<2x256xf32> to vector<1x256xf32>
    %20 = vector.broadcast %19 : vector<1x256xf32> to vector<16x256xf32>
    %21 = arith.mulf %18, %20 : vector<16x256xf32>
    %c2 = arith.constant 2 : index
    %c0_14 = arith.constant 0 : index
    %c0_15 = arith.constant 0 : index
    %22 = vector.load %arg3[%c2, %c0_14, %c0_15] : memref<9x16x16xf32, #tpu.memory_space<vmem>>, vector<1x16x16xf32>
    %23 = vector.shape_cast %22 : vector<1x16x16xf32> to vector<16x16xf32>
    %cst_16 = arith.constant dense<0.000000e+00> : vector<16x256xf32>
    %24 = tpu.matmul %23, %21, %cst_16 {dimension_numbers = #tpu.dot_dimension_numbers<[1], [0], [0], [1], [0, 0, 1, 1], [], []>} : vector<16x16xf32>, vector<16x256xf32>, vector<16x256xf32> -> vector<16x256xf32>
    %25 = arith.addf %16, %24 : vector<16x256xf32>
    %c0_17 = arith.constant 0 : index
    %c0_18 = arith.constant 0 : index
    %c31 = arith.constant 31 : index
    %26 = vector.load %arg1[%c0_17, %c0_18, %c31] : memref<1x16x320xf32, #tpu.memory_space<vmem>>, vector<1x16x256xf32>
    %27 = vector.shape_cast %26 : vector<1x16x256xf32> to vector<16x256xf32>
    %28 = vector.extract_strided_slice %0 {offsets = [0, 0], sizes = [1, 256], strides = [1, 1]} : vector<2x256xf32> to vector<1x256xf32>
    %29 = vector.broadcast %28 : vector<1x256xf32> to vector<16x256xf32>
    %30 = arith.mulf %27, %29 : vector<16x256xf32>
    %c3 = arith.constant 3 : index
    %c0_19 = arith.constant 0 : index
    %c0_20 = arith.constant 0 : index
    %31 = vector.load %arg3[%c3, %c0_19, %c0_20] : memref<9x16x16xf32, #tpu.memory_space<vmem>>, vector<1x16x16xf32>
    %32 = vector.shape_cast %31 : vector<1x16x16xf32> to vector<16x16xf32>
    %cst_21 = arith.constant dense<0.000000e+00> : vector<16x256xf32>
    %33 = tpu.matmul %32, %30, %cst_21 {dimension_numbers = #tpu.dot_dimension_numbers<[1], [0], [0], [1], [0, 0, 1, 1], [], []>} : vector<16x16xf32>, vector<16x256xf32>, vector<16x256xf32> -> vector<16x256xf32>
    %34 = arith.addf %25, %33 : vector<16x256xf32>
    %c0_22 = arith.constant 0 : index
    %c0_23 = arith.constant 0 : index
    %c32 = arith.constant 32 : index
    %35 = vector.load %arg1[%c0_22, %c0_23, %c32] : memref<1x16x320xf32, #tpu.memory_space<vmem>>, vector<1x16x256xf32>
    %36 = vector.shape_cast %35 : vector<1x16x256xf32> to vector<16x256xf32>
    %c4 = arith.constant 4 : index
    %c0_24 = arith.constant 0 : index
    %c0_25 = arith.constant 0 : index
    %37 = vector.load %arg3[%c4, %c0_24, %c0_25] : memref<9x16x16xf32, #tpu.memory_space<vmem>>, vector<1x16x16xf32>
    %38 = vector.shape_cast %37 : vector<1x16x16xf32> to vector<16x16xf32>
    %cst_26 = arith.constant dense<0.000000e+00> : vector<16x256xf32>
    %39 = tpu.matmul %38, %36, %cst_26 {dimension_numbers = #tpu.dot_dimension_numbers<[1], [0], [0], [1], [0, 0, 1, 1], [], []>} : vector<16x16xf32>, vector<16x256xf32>, vector<16x256xf32> -> vector<16x256xf32>
    %40 = arith.addf %34, %39 : vector<16x256xf32>
    %c0_27 = arith.constant 0 : index
    %c0_28 = arith.constant 0 : index
    %c33 = arith.constant 33 : index
    %41 = vector.load %arg1[%c0_27, %c0_28, %c33] : memref<1x16x320xf32, #tpu.memory_space<vmem>>, vector<1x16x256xf32>
    %42 = vector.shape_cast %41 : vector<1x16x256xf32> to vector<16x256xf32>
    %43 = vector.extract_strided_slice %0 {offsets = [1, 0], sizes = [1, 256], strides = [1, 1]} : vector<2x256xf32> to vector<1x256xf32>
    %44 = vector.broadcast %43 : vector<1x256xf32> to vector<16x256xf32>
    %45 = arith.mulf %42, %44 : vector<16x256xf32>
    %c5 = arith.constant 5 : index
    %c0_29 = arith.constant 0 : index
    %c0_30 = arith.constant 0 : index
    %46 = vector.load %arg3[%c5, %c0_29, %c0_30] : memref<9x16x16xf32, #tpu.memory_space<vmem>>, vector<1x16x16xf32>
    %47 = vector.shape_cast %46 : vector<1x16x16xf32> to vector<16x16xf32>
    %cst_31 = arith.constant dense<0.000000e+00> : vector<16x256xf32>
    %48 = tpu.matmul %47, %45, %cst_31 {dimension_numbers = #tpu.dot_dimension_numbers<[1], [0], [0], [1], [0, 0, 1, 1], [], []>} : vector<16x16xf32>, vector<16x256xf32>, vector<16x256xf32> -> vector<16x256xf32>
    %49 = arith.addf %40, %48 : vector<16x256xf32>
    %c0_32 = arith.constant 0 : index
    %c0_33 = arith.constant 0 : index
    %c47 = arith.constant 47 : index
    %50 = vector.load %arg1[%c0_32, %c0_33, %c47] : memref<1x16x320xf32, #tpu.memory_space<vmem>>, vector<1x16x256xf32>
    %51 = vector.shape_cast %50 : vector<1x16x256xf32> to vector<16x256xf32>
    %52 = vector.extract_strided_slice %0 {offsets = [0, 0], sizes = [1, 256], strides = [1, 1]} : vector<2x256xf32> to vector<1x256xf32>
    %53 = vector.broadcast %52 : vector<1x256xf32> to vector<16x256xf32>
    %54 = arith.mulf %51, %53 : vector<16x256xf32>
    %c6 = arith.constant 6 : index
    %c0_34 = arith.constant 0 : index
    %c0_35 = arith.constant 0 : index
    %55 = vector.load %arg3[%c6, %c0_34, %c0_35] : memref<9x16x16xf32, #tpu.memory_space<vmem>>, vector<1x16x16xf32>
    %56 = vector.shape_cast %55 : vector<1x16x16xf32> to vector<16x16xf32>
    %cst_36 = arith.constant dense<0.000000e+00> : vector<16x256xf32>
    %57 = tpu.matmul %56, %54, %cst_36 {dimension_numbers = #tpu.dot_dimension_numbers<[1], [0], [0], [1], [0, 0, 1, 1], [], []>} : vector<16x16xf32>, vector<16x256xf32>, vector<16x256xf32> -> vector<16x256xf32>
    %58 = arith.addf %49, %57 : vector<16x256xf32>
    %c0_37 = arith.constant 0 : index
    %c0_38 = arith.constant 0 : index
    %c48 = arith.constant 48 : index
    %59 = vector.load %arg1[%c0_37, %c0_38, %c48] : memref<1x16x320xf32, #tpu.memory_space<vmem>>, vector<1x16x256xf32>
    %60 = vector.shape_cast %59 : vector<1x16x256xf32> to vector<16x256xf32>
    %c7 = arith.constant 7 : index
    %c0_39 = arith.constant 0 : index
    %c0_40 = arith.constant 0 : index
    %61 = vector.load %arg3[%c7, %c0_39, %c0_40] : memref<9x16x16xf32, #tpu.memory_space<vmem>>, vector<1x16x16xf32>
    %62 = vector.shape_cast %61 : vector<1x16x16xf32> to vector<16x16xf32>
    %cst_41 = arith.constant dense<0.000000e+00> : vector<16x256xf32>
    %63 = tpu.matmul %62, %60, %cst_41 {dimension_numbers = #tpu.dot_dimension_numbers<[1], [0], [0], [1], [0, 0, 1, 1], [], []>} : vector<16x16xf32>, vector<16x256xf32>, vector<16x256xf32> -> vector<16x256xf32>
    %64 = arith.addf %58, %63 : vector<16x256xf32>
    %c0_42 = arith.constant 0 : index
    %c0_43 = arith.constant 0 : index
    %c49 = arith.constant 49 : index
    %65 = vector.load %arg1[%c0_42, %c0_43, %c49] : memref<1x16x320xf32, #tpu.memory_space<vmem>>, vector<1x16x256xf32>
    %66 = vector.shape_cast %65 : vector<1x16x256xf32> to vector<16x256xf32>
    %67 = vector.extract_strided_slice %0 {offsets = [1, 0], sizes = [1, 256], strides = [1, 1]} : vector<2x256xf32> to vector<1x256xf32>
    %68 = vector.broadcast %67 : vector<1x256xf32> to vector<16x256xf32>
    %69 = arith.mulf %66, %68 : vector<16x256xf32>
    %c8 = arith.constant 8 : index
    %c0_44 = arith.constant 0 : index
    %c0_45 = arith.constant 0 : index
    %70 = vector.load %arg3[%c8, %c0_44, %c0_45] : memref<9x16x16xf32, #tpu.memory_space<vmem>>, vector<1x16x16xf32>
    %71 = vector.shape_cast %70 : vector<1x16x16xf32> to vector<16x16xf32>
    %cst_46 = arith.constant dense<0.000000e+00> : vector<16x256xf32>
    %72 = tpu.matmul %71, %69, %cst_46 {dimension_numbers = #tpu.dot_dimension_numbers<[1], [0], [0], [1], [0, 0, 1, 1], [], []>} : vector<16x16xf32>, vector<16x256xf32>, vector<16x256xf32> -> vector<16x256xf32>
    %73 = arith.addf %64, %72 : vector<16x256xf32>
    %c0_47 = arith.constant 0 : index
    %c0_48 = arith.constant 0 : index
    %74 = vector.load %arg4[%c0_47, %c0_48] : memref<16x1xf32, #tpu.memory_space<vmem>>, vector<16x1xf32>
    %75 = vector.broadcast %74 : vector<16x1xf32> to vector<16x256xf32>
    %76 = arith.addf %73, %75 : vector<16x256xf32>
    %cst_49 = arith.constant 0.000000e+00 : f32
    %77 = vector.broadcast %cst_49 : f32 to vector<16x256xf32>
    %78 = arith.maximumf %76, %77 : vector<16x256xf32>
    %79 = arith.truncf %78 : vector<16x256xf32> to vector<16x256xbf16>
    %c0_50 = arith.constant 0 : index
    %c0_51 = arith.constant 0 : index
    %c0_52 = arith.constant 0 : index
    %80 = vector.load %arg5[%c0_50, %c0_51, %c0_52] : memref<1x16x256xbf16, #tpu.memory_space<vmem>>, vector<1x16x256xbf16>
    %81 = vector.shape_cast %80 : vector<1x16x256xbf16> to vector<16x256xbf16>
    %82 = vector.shape_cast %79 : vector<16x256xbf16> to vector<1x16x256xbf16>
    tpu.vector_store %arg5[%c0_50, %c0_51, %c0_52], %82 {strides = array<i32>} : memref<1x16x256xbf16, #tpu.memory_space<vmem>>, vector<1x16x256xbf16>,
    return
  }
  func.func @transform_0(%arg0: i32) -> (i32, i32, i32) {
    %c0_i32 = arith.constant 0 : i32
    %c0_i32_0 = arith.constant 0 : i32
    %c0_i32_1 = arith.constant 0 : i32
    return %arg0, %c0_i32, %c0_i32_0 : i32, i32, i32
  }
  func.func @transform_1(%arg0: i32) -> (i32, i32) {
    %c0_i32 = arith.constant 0 : i32
    %c0_i32_0 = arith.constant 0 : i32
    %c0_i32_1 = arith.constant 0 : i32
    return %c0_i32, %c0_i32_0 : i32, i32
  }
  func.func @transform_2(%arg0: i32) -> (i32, i32, i32) {
    %c0_i32 = arith.constant 0 : i32
    %c0_i32_0 = arith.constant 0 : i32
    %c0_i32_1 = arith.constant 0 : i32
    %c0_i32_2 = arith.constant 0 : i32
    return %c0_i32, %c0_i32_0, %c0_i32_1 : i32, i32, i32
  }
  func.func @transform_3(%arg0: i32) -> (i32, i32) {
    %c0_i32 = arith.constant 0 : i32
    %c0_i32_0 = arith.constant 0 : i32
    %c0_i32_1 = arith.constant 0 : i32
    return %c0_i32, %c0_i32_0 : i32, i32
  }
  func.func @transform_4(%arg0: i32) -> (i32, i32, i32) {
    %c0_i32 = arith.constant 0 : i32
    %c0_i32_0 = arith.constant 0 : i32
    %c0_i32_1 = arith.constant 0 : i32
    return %arg0, %c0_i32, %c0_i32_0 : i32, i32, i32
  }
}

module attributes {stable_mosaic.version = 11 : i64} {
  func.func @_epilogue_kernel(%arg0: i32, %arg1: i32, %arg2: memref<1x16x256xbf16, #tpu.memory_space<vmem>>, %arg3: memref<1x16x256xbf16, #tpu.memory_space<vmem>>, %arg4: memref<16x16xbf16, #tpu.memory_space<vmem>>, %arg5: memref<16x1xf32, #tpu.memory_space<vmem>>, %arg6: memref<16x16xbf16, #tpu.memory_space<vmem>>, %arg7: memref<16x1xf32, #tpu.memory_space<vmem>>, %arg8: memref<16x16xbf16, #tpu.memory_space<vmem>>, %arg9: memref<16x1xf32, #tpu.memory_space<vmem>>, %arg10: memref<1x16x256xf32, #tpu.memory_space<vmem>>) attributes {dimension_semantics = [#tpu.dimension_semantics<parallel>, #tpu.dimension_semantics<parallel>], iteration_bounds = array<i64: 2, 1>, scalar_prefetch = 0 : i64, scratch_operands = 0 : i64, tpu.core_type = #tpu.core_type<tc>, window_params = [{transform_indices = @transform_0, window_bounds = array<i64: 1, 16, 256>}, {transform_indices = @transform_1, window_bounds = array<i64: 1, 16, 256>}, {pipeline_mode = #tpu.pipeline_mode<synchronous>, transform_indices = @transform_2, window_bounds = array<i64: 16, 16>}, {pipeline_mode = #tpu.pipeline_mode<synchronous>, transform_indices = @transform_3, window_bounds = array<i64: 16, 1>}, {pipeline_mode = #tpu.pipeline_mode<synchronous>, transform_indices = @transform_4, window_bounds = array<i64: 16, 16>}, {pipeline_mode = #tpu.pipeline_mode<synchronous>, transform_indices = @transform_5, window_bounds = array<i64: 16, 1>}, {pipeline_mode = #tpu.pipeline_mode<synchronous>, transform_indices = @transform_6, window_bounds = array<i64: 16, 16>}, {pipeline_mode = #tpu.pipeline_mode<synchronous>, transform_indices = @transform_7, window_bounds = array<i64: 16, 1>}, {transform_indices = @transform_8, window_bounds = array<i64: 1, 16, 256>}]} {
    %c0 = arith.constant 0 : index
    %c0_0 = arith.constant 0 : index
    %0 = vector.load %arg4[%c0, %c0_0] : memref<16x16xbf16, #tpu.memory_space<vmem>>, vector<16x16xbf16>
    %c0_1 = arith.constant 0 : index
    %c0_2 = arith.constant 0 : index
    %c0_3 = arith.constant 0 : index
    %1 = vector.load %arg2[%c0_1, %c0_2, %c0_3] : memref<1x16x256xbf16, #tpu.memory_space<vmem>>, vector<1x16x256xbf16>
    %2 = vector.shape_cast %1 : vector<1x16x256xbf16> to vector<16x256xbf16>
    %cst = arith.constant dense<0.000000e+00> : vector<16x256xf32>
    %3 = tpu.matmul %0, %2, %cst {dimension_numbers = #tpu.dot_dimension_numbers<[1], [0], [0], [1], [0, 0, 1, 1], [], []>} : vector<16x16xbf16>, vector<16x256xbf16>, vector<16x256xf32> -> vector<16x256xf32>
    %c0_4 = arith.constant 0 : index
    %c0_5 = arith.constant 0 : index
    %4 = vector.load %arg5[%c0_4, %c0_5] : memref<16x1xf32, #tpu.memory_space<vmem>>, vector<16x1xf32>
    %5 = vector.broadcast %4 : vector<16x1xf32> to vector<16x256xf32>
    %6 = arith.addf %3, %5 : vector<16x256xf32>
    %cst_6 = arith.constant 0.000000e+00 : f32
    %7 = vector.broadcast %cst_6 : f32 to vector<16x256xf32>
    %8 = arith.maximumf %6, %7 : vector<16x256xf32>
    %c0_7 = arith.constant 0 : index
    %c0_8 = arith.constant 0 : index
    %9 = vector.load %arg6[%c0_7, %c0_8] : memref<16x16xbf16, #tpu.memory_space<vmem>>, vector<16x16xbf16>
    %c0_9 = arith.constant 0 : index
    %c0_10 = arith.constant 0 : index
    %c0_11 = arith.constant 0 : index
    %10 = vector.load %arg3[%c0_9, %c0_10, %c0_11] : memref<1x16x256xbf16, #tpu.memory_space<vmem>>, vector<1x16x256xbf16>
    %11 = vector.shape_cast %10 : vector<1x16x256xbf16> to vector<16x256xbf16>
    %cst_12 = arith.constant dense<0.000000e+00> : vector<16x256xf32>
    %12 = tpu.matmul %9, %11, %cst_12 {dimension_numbers = #tpu.dot_dimension_numbers<[1], [0], [0], [1], [0, 0, 1, 1], [], []>} : vector<16x16xbf16>, vector<16x256xbf16>, vector<16x256xf32> -> vector<16x256xf32>
    %c0_13 = arith.constant 0 : index
    %c0_14 = arith.constant 0 : index
    %13 = vector.load %arg7[%c0_13, %c0_14] : memref<16x1xf32, #tpu.memory_space<vmem>>, vector<16x1xf32>
    %14 = vector.broadcast %13 : vector<16x1xf32> to vector<16x256xf32>
    %15 = arith.addf %12, %14 : vector<16x256xf32>
    %cst_15 = arith.constant 0.000000e+00 : f32
    %16 = vector.broadcast %cst_15 : f32 to vector<16x256xf32>
    %17 = arith.maximumf %15, %16 : vector<16x256xf32>
    %18 = arith.addf %8, %17 : vector<16x256xf32>
    %19 = arith.truncf %18 : vector<16x256xf32> to vector<16x256xbf16>
    %c0_16 = arith.constant 0 : index
    %c0_17 = arith.constant 0 : index
    %20 = vector.load %arg8[%c0_16, %c0_17] : memref<16x16xbf16, #tpu.memory_space<vmem>>, vector<16x16xbf16>
    %cst_18 = arith.constant dense<0.000000e+00> : vector<16x256xf32>
    %21 = tpu.matmul %20, %19, %cst_18 {dimension_numbers = #tpu.dot_dimension_numbers<[1], [0], [0], [1], [0, 0, 1, 1], [], []>} : vector<16x16xbf16>, vector<16x256xbf16>, vector<16x256xf32> -> vector<16x256xf32>
    %c0_19 = arith.constant 0 : index
    %c0_20 = arith.constant 0 : index
    %22 = vector.load %arg9[%c0_19, %c0_20] : memref<16x1xf32, #tpu.memory_space<vmem>>, vector<16x1xf32>
    %23 = vector.broadcast %22 : vector<16x1xf32> to vector<16x256xf32>
    %24 = arith.addf %21, %23 : vector<16x256xf32>
    %cst_21 = arith.constant 0.000000e+00 : f32
    %25 = vector.broadcast %cst_21 : f32 to vector<16x256xf32>
    %26 = arith.maximumf %24, %25 : vector<16x256xf32>
    %c0_22 = arith.constant 0 : index
    %c0_23 = arith.constant 0 : index
    %c0_24 = arith.constant 0 : index
    %27 = vector.load %arg10[%c0_22, %c0_23, %c0_24] : memref<1x16x256xf32, #tpu.memory_space<vmem>>, vector<1x16x256xf32>
    %28 = vector.shape_cast %27 : vector<1x16x256xf32> to vector<16x256xf32>
    %29 = vector.shape_cast %26 : vector<16x256xf32> to vector<1x16x256xf32>
    tpu.vector_store %arg10[%c0_22, %c0_23, %c0_24], %29 {strides = array<i32>} : memref<1x16x256xf32, #tpu.memory_space<vmem>>, vector<1x16x256xf32>,
    return
  }
  func.func @transform_0(%arg0: i32, %arg1: i32) -> (i32, i32, i32) {
    %c0_i32 = arith.constant 0 : i32
    %c0_i32_0 = arith.constant 0 : i32
    return %arg0, %c0_i32, %arg1 : i32, i32, i32
  }
  func.func @transform_1(%arg0: i32, %arg1: i32) -> (i32, i32, i32) {
    %c0_i32 = arith.constant 0 : i32
    %c0_i32_0 = arith.constant 0 : i32
    return %arg0, %c0_i32, %arg1 : i32, i32, i32
  }
  func.func @transform_2(%arg0: i32, %arg1: i32) -> (i32, i32) {
    %c0_i32 = arith.constant 0 : i32
    %c0_i32_0 = arith.constant 0 : i32
    %c0_i32_1 = arith.constant 0 : i32
    return %c0_i32, %c0_i32_0 : i32, i32
  }
  func.func @transform_3(%arg0: i32, %arg1: i32) -> (i32, i32) {
    %c0_i32 = arith.constant 0 : i32
    %c0_i32_0 = arith.constant 0 : i32
    %c0_i32_1 = arith.constant 0 : i32
    return %c0_i32, %c0_i32_0 : i32, i32
  }
  func.func @transform_4(%arg0: i32, %arg1: i32) -> (i32, i32) {
    %c0_i32 = arith.constant 0 : i32
    %c0_i32_0 = arith.constant 0 : i32
    %c0_i32_1 = arith.constant 0 : i32
    return %c0_i32, %c0_i32_0 : i32, i32
  }
  func.func @transform_5(%arg0: i32, %arg1: i32) -> (i32, i32) {
    %c0_i32 = arith.constant 0 : i32
    %c0_i32_0 = arith.constant 0 : i32
    %c0_i32_1 = arith.constant 0 : i32
    return %c0_i32, %c0_i32_0 : i32, i32
  }
  func.func @transform_6(%arg0: i32, %arg1: i32) -> (i32, i32) {
    %c0_i32 = arith.constant 0 : i32
    %c0_i32_0 = arith.constant 0 : i32
    %c0_i32_1 = arith.constant 0 : i32
    return %c0_i32, %c0_i32_0 : i32, i32
  }
  func.func @transform_7(%arg0: i32, %arg1: i32) -> (i32, i32) {
    %c0_i32 = arith.constant 0 : i32
    %c0_i32_0 = arith.constant 0 : i32
    %c0_i32_1 = arith.constant 0 : i32
    return %c0_i32, %c0_i32_0 : i32, i32
  }
  func.func @transform_8(%arg0: i32, %arg1: i32) -> (i32, i32, i32) {
    %c0_i32 = arith.constant 0 : i32
    %c0_i32_0 = arith.constant 0 : i32
    return %arg0, %c0_i32, %arg1 : i32, i32, i32
  }
}

module attributes {stable_mosaic.version = 11 : i64} {
  func.func @_psa_kernel(%arg0: i32, %arg1: memref<1x16x256xbf16, #tpu.memory_space<vmem>>, %arg2: memref<9x16xbf16, #tpu.memory_space<vmem>>, %arg3: memref<16x16xbf16, #tpu.memory_space<vmem>>, %arg4: memref<2x8xf32, #tpu.memory_space<vmem>>, %arg5: memref<2x1xf32, #tpu.memory_space<vmem>>, %arg6: memref<2x1xf32, #tpu.memory_space<vmem>>, %arg7: memref<2x1xf32, #tpu.memory_space<vmem>>, %arg8: memref<16x2xf32, #tpu.memory_space<vmem>>, %arg9: memref<16x1xf32, #tpu.memory_space<vmem>>, %arg10: memref<1x16x256xbf16, #tpu.memory_space<vmem>>) attributes {dimension_semantics = [#tpu.dimension_semantics<parallel>], iteration_bounds = array<i64: 2>, scalar_prefetch = 0 : i64, scratch_operands = 0 : i64, tpu.core_type = #tpu.core_type<tc>, window_params = [{transform_indices = @transform_0, window_bounds = array<i64: 1, 16, 256>}, {pipeline_mode = #tpu.pipeline_mode<synchronous>, transform_indices = @transform_1, window_bounds = array<i64: 9, 16>}, {pipeline_mode = #tpu.pipeline_mode<synchronous>, transform_indices = @transform_2, window_bounds = array<i64: 16, 16>}, {pipeline_mode = #tpu.pipeline_mode<synchronous>, transform_indices = @transform_3, window_bounds = array<i64: 2, 8>}, {pipeline_mode = #tpu.pipeline_mode<synchronous>, transform_indices = @transform_4, window_bounds = array<i64: 2, 1>}, {pipeline_mode = #tpu.pipeline_mode<synchronous>, transform_indices = @transform_5, window_bounds = array<i64: 2, 1>}, {pipeline_mode = #tpu.pipeline_mode<synchronous>, transform_indices = @transform_6, window_bounds = array<i64: 2, 1>}, {pipeline_mode = #tpu.pipeline_mode<synchronous>, transform_indices = @transform_7, window_bounds = array<i64: 16, 2>}, {pipeline_mode = #tpu.pipeline_mode<synchronous>, transform_indices = @transform_8, window_bounds = array<i64: 16, 1>}, {transform_indices = @transform_9, window_bounds = array<i64: 1, 16, 256>}]} {
    %c0 = arith.constant 0 : index
    %c0_0 = arith.constant 0 : index
    %c0_1 = arith.constant 0 : index
    %0 = vector.load %arg1[%c0, %c0_0, %c0_1] : memref<1x16x256xbf16, #tpu.memory_space<vmem>>, vector<1x16x256xbf16>
    %1 = vector.shape_cast %0 : vector<1x16x256xbf16> to vector<16x256xbf16>
    %2 = arith.extf %1 : vector<16x256xbf16> to vector<16x256xf32>
    %c0_2 = arith.constant 0 : index
    %c0_3 = arith.constant 0 : index
    %3 = vector.load %arg2[%c0_2, %c0_3] : memref<9x16xbf16, #tpu.memory_space<vmem>>, vector<9x16xbf16>
    %cst = arith.constant dense<0.000000e+00> : vector<9x256xf32>
    %4 = tpu.matmul %3, %1, %cst {dimension_numbers = #tpu.dot_dimension_numbers<[1], [0], [0], [1], [0, 0, 1, 1], [], []>} : vector<9x16xbf16>, vector<16x256xbf16>, vector<9x256xf32> -> vector<9x256xf32>
    %5 = vector.extract_strided_slice %4 {offsets = [0, 0], sizes = [8, 256], strides = [1, 1]} : vector<9x256xf32> to vector<8x256xf32>
    %6 = vector.extract_strided_slice %4 {offsets = [8, 0], sizes = [1, 256], strides = [1, 1]} : vector<9x256xf32> to vector<1x256xf32>
    %cst_4 = arith.constant dense<0xFF800000> : vector<1xf32>
    %7 = vector.multi_reduction <maximumf>, %6, %cst_4 [1] : vector<1x256xf32> to vector<1xf32>
    %8 = vector.shape_cast %7 : vector<1xf32> to vector<1x1xf32>
    %9 = vector.broadcast %8 : vector<1x1xf32> to vector<1x256xf32>
    %10 = arith.subf %6, %9 : vector<1x256xf32>
    %11 = math.exp %10 : vector<1x256xf32>
    %cst_5 = arith.constant dense<0.000000e+00> : vector<1xf32>
    %12 = vector.multi_reduction <add>, %11, %cst_5 [1] : vector<1x256xf32> to vector<1xf32>
    %13 = vector.shape_cast %12 : vector<1xf32> to vector<1x1xf32>
    %14 = tpu.reciprocal %13 {approx = true} : vector<1x1xf32> -> vector<1x1xf32>
    %15 = vector.broadcast %14 : vector<1x1xf32> to vector<1x256xf32>
    %16 = arith.mulf %11, %15 : vector<1x256xf32>
    %17 = vector.broadcast %16 : vector<1x256xf32> to vector<8x256xf32>
    %18 = arith.mulf %5, %17 : vector<8x256xf32>
    %cst_6 = arith.constant dense<0.000000e+00> : vector<8xf32>
    %19 = vector.multi_reduction <add>, %18, %cst_6 [1] : vector<8x256xf32> to vector<8xf32>
    %20 = vector.shape_cast %19 : vector<8xf32> to vector<8x1xf32>
    %c0_7 = arith.constant 0 : index
    %c0_8 = arith.constant 0 : index
    %21 = vector.load %arg4[%c0_7, %c0_8] : memref<2x8xf32, #tpu.memory_space<vmem>>, vector<2x8xf32>
    %cst_9 = arith.constant dense<0.000000e+00> : vector<2x1xf32>
    %22 = tpu.matmul %21, %20, %cst_9 {dimension_numbers = #tpu.dot_dimension_numbers<[1], [0], [0], [1], [0, 0, 1, 1], [], []>} : vector<2x8xf32>, vector<8x1xf32>, vector<2x1xf32> -> vector<2x1xf32>
    %c0_10 = arith.constant 0 : index
    %c0_11 = arith.constant 0 : index
    %23 = vector.load %arg5[%c0_10, %c0_11] : memref<2x1xf32, #tpu.memory_space<vmem>>, vector<2x1xf32>
    %24 = arith.addf %22, %23 : vector<2x1xf32>
    %cst_12 = arith.constant dense<0.000000e+00> : vector<1xf32>
    %25 = vector.multi_reduction <add>, %24, %cst_12 [0] : vector<2x1xf32> to vector<1xf32>
    %26 = vector.shape_cast %25 : vector<1xf32> to vector<1x1xf32>
    %cst_13 = arith.constant 2.000000e+00 : f32
    %27 = vector.broadcast %cst_13 : f32 to vector<1x1xf32>
    %28 = arith.divf %26, %27 : vector<1x1xf32>
    %29 = vector.broadcast %28 : vector<1x1xf32> to vector<2x1xf32>
    %30 = arith.subf %24, %29 : vector<2x1xf32>
    %31 = vector.broadcast %28 : vector<1x1xf32> to vector<2x1xf32>
    %32 = arith.subf %24, %31 : vector<2x1xf32>
    %33 = arith.mulf %30, %32 : vector<2x1xf32>
    %cst_14 = arith.constant dense<0.000000e+00> : vector<1xf32>
    %34 = vector.multi_reduction <add>, %33, %cst_14 [0] : vector<2x1xf32> to vector<1xf32>
    %35 = vector.shape_cast %34 : vector<1xf32> to vector<1x1xf32>
    %cst_15 = arith.constant 2.000000e+00 : f32
    %36 = vector.broadcast %cst_15 : f32 to vector<1x1xf32>
    %37 = arith.divf %35, %36 : vector<1x1xf32>
    %38 = vector.broadcast %28 : vector<1x1xf32> to vector<2x1xf32>
    %39 = arith.subf %24, %38 : vector<2x1xf32>
    %cst_16 = arith.constant 9.99999974E-6 : f32
    %40 = vector.broadcast %cst_16 : f32 to vector<1x1xf32>
    %41 = arith.addf %37, %40 : vector<1x1xf32>
    %42 = math.rsqrt %41 : vector<1x1xf32>
    %43 = vector.broadcast %42 : vector<1x1xf32> to vector<2x1xf32>
    %44 = arith.mulf %39, %43 : vector<2x1xf32>
    %c0_17 = arith.constant 0 : index
    %c0_18 = arith.constant 0 : index
    %45 = vector.load %arg6[%c0_17, %c0_18] : memref<2x1xf32, #tpu.memory_space<vmem>>, vector<2x1xf32>
    %46 = arith.mulf %44, %45 : vector<2x1xf32>
    %c0_19 = arith.constant 0 : index
    %c0_20 = arith.constant 0 : index
    %47 = vector.load %arg7[%c0_19, %c0_20] : memref<2x1xf32, #tpu.memory_space<vmem>>, vector<2x1xf32>
    %48 = arith.addf %46, %47 : vector<2x1xf32>
    %cst_21 = arith.constant 0.000000e+00 : f32
    %49 = vector.broadcast %cst_21 : f32 to vector<2x1xf32>
    %50 = arith.maximumf %48, %49 : vector<2x1xf32>
    %c0_22 = arith.constant 0 : index
    %c0_23 = arith.constant 0 : index
    %51 = vector.load %arg8[%c0_22, %c0_23] : memref<16x2xf32, #tpu.memory_space<vmem>>, vector<16x2xf32>
    %cst_24 = arith.constant dense<0.000000e+00> : vector<16x1xf32>
    %52 = tpu.matmul %51, %50, %cst_24 {dimension_numbers = #tpu.dot_dimension_numbers<[1], [0], [0], [1], [0, 0, 1, 1], [], []>} : vector<16x2xf32>, vector<2x1xf32>, vector<16x1xf32> -> vector<16x1xf32>
    %c0_25 = arith.constant 0 : index
    %c0_26 = arith.constant 0 : index
    %53 = vector.load %arg9[%c0_25, %c0_26] : memref<16x1xf32, #tpu.memory_space<vmem>>, vector<16x1xf32>
    %54 = arith.addf %52, %53 : vector<16x1xf32>
    %cst_27 = arith.constant 0.000000e+00 : f32
    %55 = vector.broadcast %cst_27 : f32 to vector<16x1xf32>
    %56 = arith.subf %55, %54 : vector<16x1xf32>
    %57 = math.exp %56 : vector<16x1xf32>
    %cst_28 = arith.constant 1.000000e+00 : f32
    %58 = vector.broadcast %cst_28 : f32 to vector<16x1xf32>
    %59 = arith.addf %58, %57 : vector<16x1xf32>
    %60 = tpu.reciprocal %59 {approx = true} : vector<16x1xf32> -> vector<16x1xf32>
    %61 = vector.broadcast %60 : vector<16x1xf32> to vector<16x256xf32>
    %62 = arith.mulf %2, %61 : vector<16x256xf32>
    %c0_29 = arith.constant 0 : index
    %c0_30 = arith.constant 0 : index
    %63 = vector.load %arg3[%c0_29, %c0_30] : memref<16x16xbf16, #tpu.memory_space<vmem>>, vector<16x16xbf16>
    %64 = arith.truncf %62 : vector<16x256xf32> to vector<16x256xbf16>
    %cst_31 = arith.constant dense<0.000000e+00> : vector<16x256xf32>
    %65 = tpu.matmul %63, %64, %cst_31 {dimension_numbers = #tpu.dot_dimension_numbers<[1], [0], [0], [1], [0, 0, 1, 1], [], []>} : vector<16x16xbf16>, vector<16x256xbf16>, vector<16x256xf32> -> vector<16x256xf32>
    %66 = vector.extract_strided_slice %65 {offsets = [0, 0], sizes = [8, 256], strides = [1, 1]} : vector<16x256xf32> to vector<8x256xf32>
    %67 = vector.extract_strided_slice %65 {offsets = [8, 0], sizes = [8, 256], strides = [1, 1]} : vector<16x256xf32> to vector<8x256xf32>
    %cst_32 = arith.constant dense<0.000000e+00> : vector<8xf32>
    %68 = vector.multi_reduction <add>, %66, %cst_32 [1] : vector<8x256xf32> to vector<8xf32>
    %69 = vector.shape_cast %68 : vector<8xf32> to vector<8x1xf32>
    %cst_33 = arith.constant 2.560000e+02 : f32
    %70 = vector.broadcast %cst_33 : f32 to vector<8x1xf32>
    %71 = arith.divf %69, %70 : vector<8x1xf32>
    %cst_34 = arith.constant dense<0xFF800000> : vector<8xf32>
    %72 = vector.multi_reduction <maximumf>, %67, %cst_34 [1] : vector<8x256xf32> to vector<8xf32>
    %73 = vector.shape_cast %72 : vector<8xf32> to vector<8x1xf32>
    %74 = vector.broadcast %73 : vector<8x1xf32> to vector<8x256xf32>
    %75 = arith.subf %67, %74 : vector<8x256xf32>
    %76 = math.exp %75 : vector<8x256xf32>
    %cst_35 = arith.constant dense<0.000000e+00> : vector<8xf32>
    %77 = vector.multi_reduction <add>, %76, %cst_35 [1] : vector<8x256xf32> to vector<8xf32>
    %78 = vector.shape_cast %77 : vector<8xf32> to vector<8x1xf32>
    %79 = tpu.reciprocal %78 {approx = true} : vector<8x1xf32> -> vector<8x1xf32>
    %80 = vector.broadcast %79 : vector<8x1xf32> to vector<8x256xf32>
    %81 = arith.mulf %76, %80 : vector<8x256xf32>
    %82 = vector.broadcast %71 : vector<8x1xf32> to vector<8x256xf32>
    %83 = arith.mulf %82, %81 : vector<8x256xf32>
    %cst_36 = arith.constant dense<0.000000e+00> : vector<256xf32>
    %84 = vector.multi_reduction <add>, %83, %cst_36 [0] : vector<8x256xf32> to vector<256xf32>
    %85 = vector.shape_cast %84 : vector<256xf32> to vector<1x256xf32>
    %cst_37 = arith.constant 0.000000e+00 : f32
    %86 = vector.broadcast %cst_37 : f32 to vector<1x256xf32>
    %87 = arith.subf %86, %85 : vector<1x256xf32>
    %88 = math.exp %87 : vector<1x256xf32>
    %cst_38 = arith.constant 1.000000e+00 : f32
    %89 = vector.broadcast %cst_38 : f32 to vector<1x256xf32>
    %90 = arith.addf %89, %88 : vector<1x256xf32>
    %91 = tpu.reciprocal %90 {approx = true} : vector<1x256xf32> -> vector<1x256xf32>
    %92 = vector.broadcast %91 : vector<1x256xf32> to vector<16x256xf32>
    %93 = arith.mulf %62, %92 : vector<16x256xf32>
    %94 = arith.truncf %93 : vector<16x256xf32> to vector<16x256xbf16>
    %c0_39 = arith.constant 0 : index
    %c0_40 = arith.constant 0 : index
    %c0_41 = arith.constant 0 : index
    %95 = vector.load %arg10[%c0_39, %c0_40, %c0_41] : memref<1x16x256xbf16, #tpu.memory_space<vmem>>, vector<1x16x256xbf16>
    %96 = vector.shape_cast %95 : vector<1x16x256xbf16> to vector<16x256xbf16>
    %97 = vector.shape_cast %94 : vector<16x256xbf16> to vector<1x16x256xbf16>
    tpu.vector_store %arg10[%c0_39, %c0_40, %c0_41], %97 {strides = array<i32>} : memref<1x16x256xbf16, #tpu.memory_space<vmem>>, vector<1x16x256xbf16>,
    return
  }
  func.func @transform_0(%arg0: i32) -> (i32, i32, i32) {
    %c0_i32 = arith.constant 0 : i32
    %c0_i32_0 = arith.constant 0 : i32
    %c0_i32_1 = arith.constant 0 : i32
    return %arg0, %c0_i32, %c0_i32_0 : i32, i32, i32
  }
  func.func @transform_1(%arg0: i32) -> (i32, i32) {
    %c0_i32 = arith.constant 0 : i32
    %c0_i32_0 = arith.constant 0 : i32
    %c0_i32_1 = arith.constant 0 : i32
    return %c0_i32, %c0_i32_0 : i32, i32
  }
  func.func @transform_2(%arg0: i32) -> (i32, i32) {
    %c0_i32 = arith.constant 0 : i32
    %c0_i32_0 = arith.constant 0 : i32
    %c0_i32_1 = arith.constant 0 : i32
    return %c0_i32, %c0_i32_0 : i32, i32
  }
  func.func @transform_3(%arg0: i32) -> (i32, i32) {
    %c0_i32 = arith.constant 0 : i32
    %c0_i32_0 = arith.constant 0 : i32
    %c0_i32_1 = arith.constant 0 : i32
    return %c0_i32, %c0_i32_0 : i32, i32
  }
  func.func @transform_4(%arg0: i32) -> (i32, i32) {
    %c0_i32 = arith.constant 0 : i32
    %c0_i32_0 = arith.constant 0 : i32
    %c0_i32_1 = arith.constant 0 : i32
    return %c0_i32, %c0_i32_0 : i32, i32
  }
  func.func @transform_5(%arg0: i32) -> (i32, i32) {
    %c0_i32 = arith.constant 0 : i32
    %c0_i32_0 = arith.constant 0 : i32
    %c0_i32_1 = arith.constant 0 : i32
    return %c0_i32, %c0_i32_0 : i32, i32
  }
  func.func @transform_6(%arg0: i32) -> (i32, i32) {
    %c0_i32 = arith.constant 0 : i32
    %c0_i32_0 = arith.constant 0 : i32
    %c0_i32_1 = arith.constant 0 : i32
    return %c0_i32, %c0_i32_0 : i32, i32
  }
  func.func @transform_7(%arg0: i32) -> (i32, i32) {
    %c0_i32 = arith.constant 0 : i32
    %c0_i32_0 = arith.constant 0 : i32
    %c0_i32_1 = arith.constant 0 : i32
    return %c0_i32, %c0_i32_0 : i32, i32
  }
  func.func @transform_8(%arg0: i32) -> (i32, i32) {
    %c0_i32 = arith.constant 0 : i32
    %c0_i32_0 = arith.constant 0 : i32
    %c0_i32_1 = arith.constant 0 : i32
    return %c0_i32, %c0_i32_0 : i32, i32
  }
  func.func @transform_9(%arg0: i32) -> (i32, i32, i32) {
    %c0_i32 = arith.constant 0 : i32
    %c0_i32_0 = arith.constant 0 : i32
    %c0_i32_1 = arith.constant 0 : i32
    return %arg0, %c0_i32, %c0_i32_0 : i32, i32, i32
  }
}

module attributes {stable_mosaic.version = 11 : i64} {
  func.func @_pam_kernel(%arg0: i32, %arg1: memref<1x16x256xbf16, #tpu.memory_space<vmem>>, %arg2: memref<32x16xbf16, #tpu.memory_space<vmem>>, %arg3: memref<32x1xf32, #tpu.memory_space<vmem>>, %arg4: memref<1x1xf32, #tpu.memory_space<smem>>, %arg5: memref<1x16x256xbf16, #tpu.memory_space<vmem>>) attributes {dimension_semantics = [#tpu.dimension_semantics<parallel>], iteration_bounds = array<i64: 2>, scalar_prefetch = 0 : i64, scratch_operands = 0 : i64, tpu.core_type = #tpu.core_type<tc>, window_params = [{transform_indices = @transform_0, window_bounds = array<i64: 1, 16, 256>}, {pipeline_mode = #tpu.pipeline_mode<synchronous>, transform_indices = @transform_1, window_bounds = array<i64: 32, 16>}, {pipeline_mode = #tpu.pipeline_mode<synchronous>, transform_indices = @transform_2, window_bounds = array<i64: 32, 1>}, {transform_indices = @transform_3, window_bounds = array<i64: 1, 1>}, {transform_indices = @transform_4, window_bounds = array<i64: 1, 16, 256>}]} {
    %c0 = arith.constant 0 : index
    %c0_0 = arith.constant 0 : index
    %c0_1 = arith.constant 0 : index
    %0 = vector.load %arg1[%c0, %c0_0, %c0_1] : memref<1x16x256xbf16, #tpu.memory_space<vmem>>, vector<1x16x256xbf16>
    %1 = vector.shape_cast %0 : vector<1x16x256xbf16> to vector<16x256xbf16>
    %2 = arith.extf %1 : vector<16x256xbf16> to vector<16x256xf32>
    %c0_2 = arith.constant 0 : index
    %c0_3 = arith.constant 0 : index
    %3 = vector.load %arg2[%c0_2, %c0_3] : memref<32x16xbf16, #tpu.memory_space<vmem>>, vector<32x16xbf16>
    %cst = arith.constant dense<0.000000e+00> : vector<32x256xf32>
    %4 = tpu.matmul %3, %1, %cst {dimension_numbers = #tpu.dot_dimension_numbers<[1], [0], [0], [1], [0, 0, 1, 1], [], []>} : vector<32x16xbf16>, vector<16x256xbf16>, vector<32x256xf32> -> vector<32x256xf32>
    %c0_4 = arith.constant 0 : index
    %c0_5 = arith.constant 0 : index
    %5 = vector.load %arg3[%c0_4, %c0_5] : memref<32x1xf32, #tpu.memory_space<vmem>>, vector<32x1xf32>
    %6 = vector.broadcast %5 : vector<32x1xf32> to vector<32x256xf32>
    %7 = arith.addf %4, %6 : vector<32x256xf32>
    %8 = vector.extract_strided_slice %7 {offsets = [0, 0], sizes = [8, 256], strides = [1, 1]} : vector<32x256xf32> to vector<8x256xf32>
    %9 = vector.extract_strided_slice %7 {offsets = [8, 0], sizes = [8, 256], strides = [1, 1]} : vector<32x256xf32> to vector<8x256xf32>
    %10 = vector.extract_strided_slice %7 {offsets = [16, 0], sizes = [16, 256], strides = [1, 1]} : vector<32x256xf32> to vector<16x256xf32>
    %11 = arith.mulf %8, %8 : vector<8x256xf32>
    %cst_6 = arith.constant dense<0.000000e+00> : vector<256xf32>
    %12 = vector.multi_reduction <add>, %11, %cst_6 [0] : vector<8x256xf32> to vector<256xf32>
    %13 = vector.shape_cast %12 : vector<256xf32> to vector<1x256xf32>
    %cst_7 = arith.constant 9.99999996E-13 : f32
    %14 = vector.broadcast %cst_7 : f32 to vector<1x256xf32>
    %15 = arith.addf %13, %14 : vector<1x256xf32>
    %16 = math.rsqrt %15 : vector<1x256xf32>
    %17 = vector.broadcast %16 : vector<1x256xf32> to vector<8x256xf32>
    %18 = arith.mulf %8, %17 : vector<8x256xf32>
    %19 = arith.mulf %9, %9 : vector<8x256xf32>
    %cst_8 = arith.constant dense<0.000000e+00> : vector<256xf32>
    %20 = vector.multi_reduction <add>, %19, %cst_8 [0] : vector<8x256xf32> to vector<256xf32>
    %21 = vector.shape_cast %20 : vector<256xf32> to vector<1x256xf32>
    %cst_9 = arith.constant 9.99999996E-13 : f32
    %22 = vector.broadcast %cst_9 : f32 to vector<1x256xf32>
    %23 = arith.addf %21, %22 : vector<1x256xf32>
    %24 = math.rsqrt %23 : vector<1x256xf32>
    %25 = vector.broadcast %24 : vector<1x256xf32> to vector<8x256xf32>
    %26 = arith.mulf %9, %25 : vector<8x256xf32>
    %cst_10 = arith.constant dense<0.000000e+00> : vector<8xf32>
    %27 = vector.multi_reduction <add>, %26, %cst_10 [1] : vector<8x256xf32> to vector<8xf32>
    %28 = vector.shape_cast %27 : vector<8xf32> to vector<8x1xf32>
    %cst_11 = arith.constant 9.99999997E-7 : f32
    %29 = vector.broadcast %cst_11 : f32 to vector<8x1xf32>
    %30 = arith.addf %28, %29 : vector<8x1xf32>
    %31 = vector.broadcast %30 : vector<8x1xf32> to vector<8x256xf32>
    %32 = arith.mulf %18, %31 : vector<8x256xf32>
    %cst_12 = arith.constant dense<0.000000e+00> : vector<256xf32>
    %33 = vector.multi_reduction <add>, %32, %cst_12 [0] : vector<8x256xf32> to vector<256xf32>
    %34 = vector.shape_cast %33 : vector<256xf32> to vector<1x256xf32>
    %cst_13 = arith.constant 2.560000e+02 : f32
    %35 = vector.broadcast %cst_13 : f32 to vector<1x256xf32>
    %36 = arith.addf %35, %34 : vector<1x256xf32>
    %37 = tpu.reciprocal %36 {approx = true} : vector<1x256xf32> -> vector<1x256xf32>
    %cst_14 = arith.constant dense<0.000000e+00> : vector<16xf32>
    %38 = vector.multi_reduction <add>, %10, %cst_14 [1] : vector<16x256xf32> to vector<16xf32>
    %39 = vector.shape_cast %38 : vector<16xf32> to vector<16x1xf32>
    %cst_15 = arith.constant dense<0.000000e+00> : vector<16x8xf32>
    %40 = tpu.matmul %10, %26, %cst_15 {dimension_numbers = #tpu.dot_dimension_numbers<[1], [1], [0], [0], [0, 0, 1, 0], [], []>} : vector<16x256xf32>, vector<8x256xf32>, vector<16x8xf32> -> vector<16x8xf32>
    %cst_16 = arith.constant dense<0.000000e+00> : vector<16x256xf32>
    %41 = tpu.matmul %40, %18, %cst_16 {dimension_numbers = #tpu.dot_dimension_numbers<[1], [0], [0], [1], [0, 0, 1, 1], [], []>} : vector<16x8xf32>, vector<8x256xf32>, vector<16x256xf32> -> vector<16x256xf32>
    %42 = vector.broadcast %39 : vector<16x1xf32> to vector<16x256xf32>
    %43 = arith.addf %42, %41 : vector<16x256xf32>
    %c0_17 = arith.constant 0 : index
    %c0_18 = arith.constant 0 : index
    %44 = memref.load %arg4[%c0_17, %c0_18] : memref<1x1xf32, #tpu.memory_space<smem>>
    %45 = vector.broadcast %37 : vector<1x256xf32> to vector<16x256xf32>
    %46 = arith.mulf %43, %45 : vector<16x256xf32>
    %47 = vector.broadcast %44 : f32 to vector<16x256xf32>
    %48 = arith.mulf %47, %46 : vector<16x256xf32>
    %49 = arith.addf %2, %48 : vector<16x256xf32>
    %50 = arith.truncf %49 : vector<16x256xf32> to vector<16x256xbf16>
    %c0_19 = arith.constant 0 : index
    %c0_20 = arith.constant 0 : index
    %c0_21 = arith.constant 0 : index
    %51 = vector.load %arg5[%c0_19, %c0_20, %c0_21] : memref<1x16x256xbf16, #tpu.memory_space<vmem>>, vector<1x16x256xbf16>
    %52 = vector.shape_cast %51 : vector<1x16x256xbf16> to vector<16x256xbf16>
    %53 = vector.shape_cast %50 : vector<16x256xbf16> to vector<1x16x256xbf16>
    tpu.vector_store %arg5[%c0_19, %c0_20, %c0_21], %53 {strides = array<i32>} : memref<1x16x256xbf16, #tpu.memory_space<vmem>>, vector<1x16x256xbf16>,
    return
  }
  func.func @transform_0(%arg0: i32) -> (i32, i32, i32) {
    %c0_i32 = arith.constant 0 : i32
    %c0_i32_0 = arith.constant 0 : i32
    %c0_i32_1 = arith.constant 0 : i32
    return %arg0, %c0_i32, %c0_i32_0 : i32, i32, i32
  }
  func.func @transform_1(%arg0: i32) -> (i32, i32) {
    %c0_i32 = arith.constant 0 : i32
    %c0_i32_0 = arith.constant 0 : i32
    %c0_i32_1 = arith.constant 0 : i32
    return %c0_i32, %c0_i32_0 : i32, i32
  }
  func.func @transform_2(%arg0: i32) -> (i32, i32) {
    %c0_i32 = arith.constant 0 : i32
    %c0_i32_0 = arith.constant 0 : i32
    %c0_i32_1 = arith.constant 0 : i32
    return %c0_i32, %c0_i32_0 : i32, i32
  }
  func.func @transform_3(%arg0: i32) -> (i32, i32) {
    %c0_i32 = arith.constant 0 : i32
    %c0_i32_0 = arith.constant 0 : i32
    %c0_i32_1 = arith.constant 0 : i32
    return %c0_i32, %c0_i32_0 : i32, i32
  }
  func.func @transform_4(%arg0: i32) -> (i32, i32, i32) {
    %c0_i32 = arith.constant 0 : i32
    %c0_i32_0 = arith.constant 0 : i32
    %c0_i32_1 = arith.constant 0 : i32
    return %arg0, %c0_i32, %c0_i32_0 : i32, i32, i32
  }
}

</mosaic_0001>

<bundles_post_ra>
// kernel: _lambda_.6
= control target key start
LH: loop header
LB: loop body
LE: loop exit
PB: predicated region body
PF: predicated region fallthrough
CT: control target
= control target key end

     0   :  { %s851_s30 = smov 0   ;;  %s942_s0 = inlined_call_operand.vmem [shape: bf16[2,16,256], index: 0, kind: input, shape index: {}]   ;;  %s943_s1 = inlined_call_operand.vmem [shape: bf16[9,16], index: 1, kind: input, shape index: {}]   ;;  %s944_s2 = inlined_call_operand.vmem [shape: bf16[16,16], index: 2, kind: input, shape index: {}]   ;;  %s945_s3 = inlined_call_operand.vmem [shape: f32[2,8], index: 3, kind: input, shape index: {}]   ;;  %s946_s4 = inlined_call_operand.vmem [shape: f32[2,1], index: 4, kind: input, shape index: {}]   ;;  %s947_s5 = inlined_call_operand.vmem [shape: f32[2,1], index: 5, kind: input, shape index: {}]   ;;  %s948_s6 = inlined_call_operand.vmem [shape: f32[2,1], index: 6, kind: input, shape index: {}]   ;;  %s949_s7 = inlined_call_operand.vmem [shape: f32[16,2], index: 7, kind: input, shape index: {}]   ;;  %s950_s8 = inlined_call_operand.vmem [shape: f32[16,1], index: 8, kind: input, shape index: {}]   ;;  %s951_s9 = inlined_call_operand.vmem [shape: bf16[2,16,256], index: 9, kind: output, shape index: {}]  }
   0x1 LB: > { %s700_s10 = sadd.s32 4294967295, %s796_s30   ;;  %p704_p0 = scmp.ge.s32.totalorder %s796_s30, 1  ;;  %s796_s30 = sphi %s851_s30, %s19_s30  }
   0x2   : > { %p287_p1 = scmp.lt.s32.totalorder %s796_s30, 3 }
   0x4   : > { %p288_p2 = pnand %p704_p0, %p287_p1 }
   0x5   : > { %p323_p3 = scmp.lt.s32.totalorder (!%p288_p2), %s700_s10, 1 }
   0x6   : > { %291 = sbr.rel (%p288_p2) target bundleno = 1443 (0x5a3), region = 56 }
   0xb   : > { %s953_s10 = smov (!%p323_p3, %s700_s10), 1  ;;  %v711_v0 = vld [vmem:[%s943_s1] sm:$0xf]  ;;  %v739_v1 = vld [vmem:[%s943_s1] sm:$0x10]  ;;  %vm357_vm0 = vcmask 130048  }
   0xc   : > { %s735_s11 = sshll.u32 %s953_s10, 4  ;;  %v712_v8 = vor.u32 %v739_v1, %v711_v0  ;;  %vm389_vm1 = vcmask 1040384   ;;  %v416_v35 = vld [vmem:[%s945_s3] sm:$0x3]  ;;  %vm418_vm2 = vcmask 64512   ;;  %v798_v37 = vmov 2.0  }
   0xd   : > { %s867_s14 = scalar_lea.vmem %s942_s0, %s735_s11  ;;  %v417_v40 = vld [vmem:[%s946_s4] sm:$0x3]  ;;  %vm442_vm3 = vcmask 1024   ;;  %vm496_vm8 = vcmask 1041408   ;;  %vm489_vm9 = vcmask 15360   ;;  %s332_s21 = scalar_lea.vmem %s951_s9, %s735_s11 }
   0xe   : > { %v715_v2 = vld [vmem:[%s867_s14] sm:$0xf]  ;;  %v738_v3 = vld [vmem:[%s867_s14 + $0x4] sm:$0xf0]  ;;  %v737_v4 = vld [vmem:[%s867_s14 + $0x4] sm:$0xf] }
   0xf   : > { %v716_v5 = vor.u32 %v738_v3, %v715_v2  ;;  %v717_v6 = vld [vmem:[%s867_s14 + $0x8] sm:$0xf0] }
  0x10   : > { %v720_v7 = vor.u32 %v737_v4, %v717_v6 }
  0x11   : > { %368 = vmatpush.bf16.msra.mxu0 %v716_v5 }
  0x12   : > { %382 = vmatpush.bf16.msra.mxu1 %v720_v7 }
  0x14   : > { %721 = vmatmul.msk.bf16.vlgmr.msra.gmra.mxu0 %vm357_vm0, %v712_v8 }
  0x15   : > { %722 = vmatmul.msk.bf16.vlgmr.msra.gmra.mxu1 %vm357_vm0, %v712_v8 }
  0x91   : > { %v370_v9 = vpop.f32.mrf.mxu0 }
  0x92   : > { %v384_v10 = vpop.f32.mrf.mxu1 }
  0x99   : > { %v372_v11 = vpop.f32.mrf.mxu0 }
  0x9a   : > { %v386_v12 = vpop.f32.mrf.mxu1  ;;  %v390_v13 = vsel %vm389_vm1, %v372_v11, -inf }
  0x9b   : > { %v391_v14 = vsel %vm389_vm1, %v386_v12, -inf }
  0x9c   : > { %v392_v15 = vmax.f32 %v390_v13, %v391_v14 }
  0x9e   : > { %393 = vmax.xlane.f32.xlu0 %v392_v15  ;;  %v485_v15 = vld [vmem:[%s949_s7] sm:$0xff] }
 0x111   : > { %v394_v16 = vpop.xlane.xlu0 %393 }
 0x112   : > { %v395_v17 = vsub.f32 %v372_v11, %v394_v16  ;;  %v396_v18 = vsub.f32 %v386_v12, %v394_v16  ;;  %v482_v11 = vld [vmem:[%s948_s6] sm:$0x3]  ;;  %v486_v16 = vld [vmem:[%s949_s7 + $0x8] sm:$0xff] }
 0x114   : > { %v397_v19 = vmul.f32 1.442695, %v395_v17  ;;  %v399_v20 = vmul.f32 1.442695, %v396_v18  ;;  %v799_v17 = vmov 0   ;;  %v487_v18 = vld [vmem:[%s950_s8] sm:$0xff] }
 0x115   : > { %753 = vset.pattern.permute.xlu1 %v799_v17  ;;  %754 = vset.pattern.permute.xlu2 %v799_v17 }
 0x116   : > { %756 = vpow2.f32 %v397_v19  ;;  %755 = vset.pattern.permute.xlu0 %v799_v17 }
 0x117   : > { %758 = vpow2.f32 %v399_v20 }
 0x11c   : > { %v757_v21 = vpop.eup %756 }
 0x11d   : > { %v759_v22 = vpop.eup %758  ;;  %v401_v23 = vsel %vm389_vm1, %v757_v21, 0.0 }
 0x11e   : > { %v402_v24 = vsel %vm389_vm1, %v759_v22, 0.0 }
 0x11f   : > { %v403_v25 = vadd.f32 %v402_v24, %v401_v23 }
 0x121   : > { %404 = vadd.xlane.f32.xlu0 %v403_v25 }
 0x194   : > { %v405_v26 = vpop.xlane.xlu0 %404 }
 0x195   : > { %760 = vrcp.f32 %v405_v26 }
 0x196   : > { %762 = vrcp.f32 %v798_v37 }
 0x19b   : > { %v761_v27 = vpop.eup %760 }
 0x19c   : > { %v407_v28 = vmul.f32 %v761_v27, %v757_v21  ;;  %v408_v29 = vmul.f32 %v761_v27, %v759_v22  ;;  %v763_v38 = vpop.eup %762  ;;  %v488_v22 = vld [vmem:[%s950_s8 + $0x8] sm:$0xff] }
 0x19d   : > { %v451_v39 = vmul.f32 2.0, %v763_v38  ;;  %vm455_vm4 = vweird.f32 %v763_v38 }
 0x19e   : > { %v409_v30 = vperm.slane %v407_v28, 0  ;;  %v410_v31 = vperm.slane %v408_v29, 0 }
 0x19f   : > { %v452_v43 = vsub.f32 1.0, %v451_v39 }
 0x1a0   : > { %v411_v32 = vmul.f32 %v409_v30, %v370_v9  ;;  %v412_v33 = vmul.f32 %v410_v31, %v384_v10  ;;  %v480_v9 = vld [vmem:[%s947_s5] sm:$0x3] }
 0x1a1   : > { %v453_v46 = vmul.f32 %v763_v38, %v452_v43 }
 0x1a2   : > { %v413_v34 = vadd.f32 %v412_v33, %v411_v32 }
 0x1a3   : > { %v454_v49 = vadd.f32 %v763_v38, %v453_v46 }
 0x1a4   : > { %414 = vadd.xlane.f32.xlu1 %v413_v34  ;;  %v335_v34 = vld [vmem:[%s867_s14 + $0x8] sm:$0xff] }
 0x1a5   : > { %v456_v52 = vsel %vm455_vm4, %v763_v38, %v454_v49  ;;  %v339_v37 = vunpack.c.h.bf16 %v335_v34 }
 0x217   : > { %v415_v36 = vpop.xlane.xlu1 %414 }
 0x218   : > { %437 = vmatpush.msra.mxu2 %v415_v36  ;;  %v338_v36 = vunpack.c.l.bf16 %v335_v34 }
 0x219   : > { %723 = vmatmul.msk.f32.vlgmr.msra.gmra.mxu2 %vm418_vm2, %v416_v35  ;;  %v334_v35 = vld [vmem:[%s867_s14] sm:$0xff] }
 0x21a   : > { %v336_v39 = vunpack.c.l.bf16 %v334_v35 }
 0x29c   : > { %v439_v41 = vpop.f32.mrf.mxu2 }
 0x29d   : > { %v440_v42 = vadd.f32 %v439_v41, %v417_v40  ;;  %v337_v40 = vunpack.c.h.bf16 %v334_v35 }
 0x29f   : > { %v443_v44 = vsel %vm442_vm3, %v440_v42, 0.0 }
 0x2a0   : > { %v444_v45 = vrot.slane %v443_v44, 4 }
 0x2a2   : > { %v445_v47 = vadd.f32 %v444_v45, %v443_v44 }
 0x2a4   : > { %v446_v48 = vrot.slane %v445_v47, 2 }
 0x2a6   : > { %v447_v50 = vadd.f32 %v446_v48, %v445_v47  ;;  %v740_v48 = vld [vmem:[%s944_s2] sm:$0xff] }
 0x2a8   : > { %v448_v51 = vrot.slane %v447_v50, 1 }
 0x2aa   : > { %v449_v53 = vadd.f32 %v448_v51, %v447_v50 }
 0x2ac   : > { %v457_v54 = vmul.f32 %v456_v52, %v449_v53 }
 0x2ae   : > { %v458_v55 = vsub.f32 %v440_v42, %v457_v54 }
 0x2b0   : > { %v459_v56 = vmul.f32 %v458_v55, %v458_v55 }
 0x2b2   : > { %v460_v57 = vsel %vm442_vm3, %v459_v56, 0.0 }
 0x2b3   : > { %v461_v58 = vrot.slane %v460_v57, 4 }
 0x2b5   : > { %v462_v59 = vadd.f32 %v461_v58, %v460_v57 }
 0x2b7   : > { %v463_v60 = vrot.slane %v462_v59, 2 }
 0x2b9   : > { %v464_v61 = vadd.f32 %v463_v60, %v462_v59 }
 0x2bb   : > { %v465_v62 = vrot.slane %v464_v61, 1 }
 0x2bd   : > { %v466_v63 = vadd.f32 %v465_v62, %v464_v61 }
 0x2bf   : > { %v467_v0 = vmul.f32 %v466_v63, %v456_v52  ;;  %v800_v63 = vmov 256.0  }
 0x2c1   : > { %v468_v1 = vadd.f32 1e-05, %v467_v0 }
 0x2c3   : > { %764 = vrsqrt.f32 %v468_v1  ;;  %vm475_vm6 = vweird.f32 %v468_v1 }
 0x2c9   : > { %v765_v2 = vpop.eup %764 }
 0x2ca   : > { %v470_v3 = vmul.f32 %v765_v2, %v468_v1  ;;  %vm476_vm5 = vweird.f32 %v765_v2 }
 0x2cb   : > { %vm477_vm7 = vmor %vm475_vm6, %vm476_vm5 }
 0x2cc   : > { %v471_v4 = vmul.f32 %v765_v2, %v470_v3 }
 0x2ce   : > { %v472_v5 = vmul.f32 0.5, %v471_v4 }
 0x2d0   : > { %v473_v6 = vsub.f32 1.5, %v472_v5 }
 0x2d2   : > { %v474_v7 = vmul.f32 %v765_v2, %v473_v6 }
 0x2d4   : > { %v478_v8 = vsel %vm477_vm7, %v765_v2, %v474_v7 }
 0x2d5   : > { %v479_v10 = vmul.f32 %v478_v8, %v458_v55 }
 0x2d7   : > { %v481_v12 = vmul.f32 %v480_v9, %v479_v10 }
 0x2d9   : > { %v483_v13 = vadd.f32 %v482_v11, %v481_v12 }
 0x2db   : > { %v484_v14 = vmax.f32 %v483_v13, 0.0 }
 0x2dd   : > { %724 = vmatpush.msk.msrb.mxu0 %vm496_vm8, %v484_v14  ;;  %741 = vmatpush.msk.msra.mxu3 %vm496_vm8, %v484_v14 }
 0x2de   : > { %725 = vmatmul.msk.f32.vlgmr.msrb.gmra.mxu0 %vm489_vm9, %v485_v15  ;;  %726 = vmatmul.msk.f32.vlgmr.msra.gmra.mxu3 %vm489_vm9, %v486_v16 }
 0x35b   : > { %v517_v19 = vpop.f32.mrf.mxu0 }
 0x35c   : > { %v518_v20 = vadd.f32 %v517_v19, %v487_v18 }
 0x35e   : > { %v523_v21 = vsub.f32 0.0, %v518_v20 }
 0x360   : > { %v525_v23 = vmul.f32 1.442695, %v523_v21 }
 0x361   : > { %v520_v24 = vpop.f32.mrf.mxu3 }
 0x362   : > { %766 = vpow2.f32 %v525_v23  ;;  %v521_v25 = vadd.f32 %v520_v24, %v488_v22 }
 0x364   : > { %v524_v26 = vsub.f32 0.0, %v521_v25 }
 0x366   : > { %v527_v27 = vmul.f32 1.442695, %v524_v26 }
 0x368   : > { %v767_v28 = vpop.eup %766  ;;  %768 = vpow2.f32 %v527_v27 }
 0x369   : > { %v529_v29 = vadd.f32 1.0, %v767_v28 }
 0x36b   : > { %770 = vrcp.f32 %v529_v29 }
 0x36e   : > { %v769_v30 = vpop.eup %768 }
 0x36f   : > { %v530_v31 = vadd.f32 1.0, %v769_v30 }
 0x371   : > { %v771_v32 = vpop.eup %770  ;;  %772 = vrcp.f32 %v530_v31 }
 0x372   : > { %535 = vperm.xlu1 %753, %v771_v32  }
 0x377   : > { %v773_v33 = vpop.eup %772 }
 0x378   : > { %540 = vperm.xlu2 %754, %v773_v33  }
 0x3d2   : > { %v541_v38 = vpop.permute.xlu2 %540 }
 0x3d3   : > { %v913_v41 = vmul.f32 %v541_v38, %v338_v36  ;;  %v915_v42 = vmul.f32 %v541_v38, %v339_v37 }
 0x3e4   : > { %v536_v43 = vpop.permute.xlu1 %535 }
 0x3e5   : > { %v917_v44 = vmul.f32 %v536_v43, %v336_v39  ;;  %v919_v45 = vmul.f32 %v536_v43, %v337_v40 }
 0x3e7   : > { %v549_v46 = vpack.c.bf16 %v913_v41, %v917_v44  ;;  %v550_v47 = vpack.c.bf16 %v915_v42, %v919_v45 }
 0x3e9   : > { %566 = vmatpush.bf16.msrb.mxu2 %v549_v46  ;;  %580 = vmatpush.bf16.msrb.mxu3 %v550_v47 }
 0x3ec   : > { %731 = vmatmul.msk.bf16.vlgmr.msrb.gmra.mxu2 %vm357_vm0, %v740_v48  ;;  %732 = vmatmul.msk.bf16.vlgmr.msrb.gmra.mxu3 %vm357_vm0, %v740_v48 }
 0x46f   : > { %v568_v49 = vpop.f32.mrf.mxu2  ;;  %v582_v50 = vpop.f32.mrf.mxu3 }
 0x470   : > { %v587_v51 = vadd.f32 %v582_v50, %v568_v49 }
 0x477   : > { %v570_v52 = vpop.f32.mrf.mxu2  ;;  %v584_v53 = vpop.f32.mrf.mxu3 }
 0x478   : > { %v598_v54 = vmax.f32 %v570_v52, %v584_v53 }
 0x47a   : > { %599 = vmax.xlane.f32.xlu2 %v598_v54 }
 0x4ed   : > { %v600_v55 = vpop.xlane.xlu2 %599 }
 0x4ee   : > { %v601_v56 = vsub.f32 %v570_v52, %v600_v55  ;;  %v602_v57 = vsub.f32 %v584_v53, %v600_v55 }
 0x4f0   : > { %v603_v58 = vmul.f32 1.442695, %v601_v56  ;;  %v605_v59 = vmul.f32 1.442695, %v602_v57 }
 0x4f2   : > { %774 = vpow2.f32 %v603_v58 }
 0x4f3   : > { %776 = vpow2.f32 %v605_v59 }
 0x4f4   : > { %778 = vrcp.f32 %v800_v63 }
 0x4f8   : > { %v775_v60 = vpop.eup %774 }
 0x4f9   : > { %v777_v61 = vpop.eup %776 }
 0x4fa   : > { %v607_v62 = vadd.f32 %v777_v61, %v775_v60  ;;  %v779_v0 = vpop.eup %778 }
 0x4fb   : > { %v591_v1 = vmul.f32 256.0, %v779_v0  ;;  %vm595_vm10 = vweird.f32 %v779_v0 }
 0x4fc   : > { %608 = vadd.xlane.f32.xlu0 %v607_v62 }
 0x4fd   : > { %v592_v2 = vsub.f32 1.0, %v591_v1 }
 0x4ff   : > { %v593_v3 = vmul.f32 %v779_v0, %v592_v2 }
 0x501   : > { %v594_v5 = vadd.f32 %v779_v0, %v593_v3 }
 0x503   : > { %v596_v6 = vsel %vm595_vm10, %v779_v0, %v594_v5 }
 0x504   : > { %588 = vadd.xlane.f32.xlu0 %v587_v51 }
 0x56f   : > { %v609_v4 = vpop.xlane.xlu0 %608 }
 0x570   : > { %780 = vrcp.f32 %v609_v4 }
 0x576   : > { %v781_v7 = vpop.eup %780 }
 0x577   : > { %v611_v8 = vmul.f32 %v781_v7, %v775_v60  ;;  %v612_v9 = vmul.f32 %v781_v7, %v777_v61  ;;  %v589_v10 = vpop.xlane.xlu0 %588 }
 0x578   : > { %v597_v11 = vmul.f32 %v596_v6, %v589_v10 }
 0x57a   : > { %v613_v12 = vmul.f32 %v611_v8, %v597_v11  ;;  %v614_v13 = vmul.f32 %v612_v9, %v597_v11 }
 0x57c   : > { %v615_v14 = vrot.slane %v613_v12, 4  ;;  %v621_v15 = vrot.slane %v614_v13, 4 }
 0x57e   : > { %v616_v16 = vadd.f32 %v615_v14, %v613_v12  ;;  %v622_v17 = vadd.f32 %v621_v15, %v614_v13 }
 0x580   : > { %v617_v18 = vrot.slane %v616_v16, 2  ;;  %v623_v19 = vrot.slane %v622_v17, 2 }
 0x582   : > { %v618_v20 = vadd.f32 %v617_v18, %v616_v16  ;;  %v624_v21 = vadd.f32 %v623_v19, %v622_v17 }
 0x584   : > { %v619_v22 = vrot.slane %v618_v20, 1  ;;  %v625_v23 = vrot.slane %v624_v21, 1 }
 0x586   : > { %v620_v24 = vadd.f32 %v619_v22, %v618_v20  ;;  %v626_v25 = vadd.f32 %v625_v23, %v624_v21 }
 0x588   : > { %v627_v26 = vsub.f32 0.0, %v620_v24  ;;  %v628_v27 = vsub.f32 0.0, %v626_v25 }
 0x58a   : > { %v629_v28 = vmul.f32 1.442695, %v627_v26  ;;  %v631_v29 = vmul.f32 1.442695, %v628_v27 }
 0x58c   : > { %782 = vpow2.f32 %v629_v28 }
 0x58d   : > { %784 = vpow2.f32 %v631_v29 }
 0x592   : > { %v783_v30 = vpop.eup %782 }
 0x593   : > { %v785_v31 = vpop.eup %784  ;;  %v633_v32 = vadd.f32 1.0, %v783_v30 }
 0x594   : > { %v634_v33 = vadd.f32 1.0, %v785_v31 }
 0x595   : > { %786 = vrcp.f32 %v633_v32 }
 0x596   : > { %788 = vrcp.f32 %v634_v33 }
 0x59b   : > { %v787_v34 = vpop.eup %786 }
 0x59c   : > { %v789_v35 = vpop.eup %788  ;;  %v637_v36 = vmul.f32 %v787_v34, %v917_v44  ;;  %v639_v37 = vmul.f32 %v787_v34, %v913_v41 }
 0x59d   : > { %v638_v38 = vmul.f32 %v789_v35, %v919_v45  ;;  %v640_v39 = vmul.f32 %v789_v35, %v915_v42 }
 0x59f   : > { %v641_v40 = vpack.c.bf16 %v638_v38, %v637_v36  ;;  %v642_v43 = vpack.c.bf16 %v640_v39, %v639_v37 }
 0x5a1   : > { %643 = vst [vmem:[%s332_s21] sm:$0xff] %v641_v40 }
 0x5a2   : > { %644 = vst [vmem:[%s332_s21 + $0x8] sm:$0xff] %v642_v43 }
 0x5a3 PF: > { %s19_s30 = sadd.s32 1, %s796_s30  }
 0x5a4   : > { %p16_p4 = scmp.ge.s32.totalorder %s19_s30, 4  }
 0x5a6   :  { %18 = sbr.rel (!%p16_p4) target bundleno = 1 (0x1), region = 86 }

// kernel: _lambda_.7
= control target key start
LH: loop header
LB: loop body
LE: loop exit
PB: predicated region body
PF: predicated region fallthrough
CT: control target
= control target key end

     0   :  { %s839_s27 = smov 0   ;;  %s841_s28 = smov 0   ;;  %s912_s0 = inlined_call_operand.vmem [shape: bf16[2,16,256], index: 0, kind: input, shape index: {}]   ;;  %s913_s1 = inlined_call_operand.vmem [shape: bf16[2,16,256], index: 1, kind: input, shape index: {}]   ;;  %s914_s2 = inlined_call_operand.vmem [shape: bf16[16,16], index: 2, kind: input, shape index: {}]   ;;  %s915_s3 = inlined_call_operand.vmem [shape: f32[16,1], index: 3, kind: input, shape index: {}]   ;;  %s916_s4 = inlined_call_operand.vmem [shape: bf16[16,16], index: 4, kind: input, shape index: {}]   ;;  %s917_s5 = inlined_call_operand.vmem [shape: f32[16,1], index: 5, kind: input, shape index: {}]   ;;  %s918_s6 = inlined_call_operand.vmem [shape: bf16[16,16], index: 6, kind: input, shape index: {}]   ;;  %s919_s7 = inlined_call_operand.vmem [shape: f32[16,1], index: 7, kind: input, shape index: {}]   ;;  %s920_s8 = inlined_call_operand.vmem [shape: f32[2,16,256], index: 8, kind: output, shape index: {}]  }
   0x1   :  { %s843_s29 = smov 0  }
   0x2 LB: > { %s30_s30 = sadd.s32 1, %s787_s28  ;;  %p688_p0 = scmp.ge.s32.totalorder %s791_s29, 1  ;;  %s791_s29 = sphi %s843_s29, %s18_s29   ;;  %s787_s28 = sphi %s841_s28, %s922_s28   ;;  %s783_s27 = sphi %s839_s27, %s921_s27  }
   0x3   : > { %p32_p1 = scmp.ge.s32.totalorder %s30_s30, 2  ;;  %p300_p2 = scmp.lt.s32.totalorder %s791_s29, 3 }
   0x5   : > { %s924_s30 = smov (%p32_p1, %s30_s30), 0  ;;  %p301_p3 = pnand %p688_p0, %p300_p2 }
   0x6   : > { %p352_p4 = scmp.lt.s32.totalorder (!%p301_p3), %s783_s27, 1 }
   0x7   : > { %304 = sbr.rel (%p301_p3) target bundleno = 314 (0x13a), region = 52 }
   0xc   : > { %v453_v0 = vld [vmem:[%s917_s5] sm:$0xff]  ;;  %v793_v1 = vmov 0   ;;  %s926_s27 = smov (!%p352_p4, %s783_s27), 1  ;;  %v454_v15 = vld [vmem:[%s917_s5 + $0x8] sm:$0xff]  ;;  %vm413_vm0 = vcmask 130048  }
   0xd   : > { %767 = vset.pattern.permute.xlu1 %v793_v1  ;;  %766 = vset.pattern.permute.xlu0 %v793_v1  ;;  %v386_v2 = vld [vmem:[%s915_s3] sm:$0xff]  ;;  %s731_s13 = sshll.u32 %s926_s27, 4  ;;  %v387_v18 = vld [vmem:[%s915_s3 + $0x8] sm:$0xff] }
   0xe   : > { %457 = vperm.xlu1 %767, %v453_v0   ;;  %390 = vperm.xlu0 %766, %v386_v2   ;;  %s359_s16 = scalar_lea.vmem %s912_s0, %s731_s13  ;;  %s369_s19 = scalar_lea.vmem %s913_s1, %s731_s13  ;;  %v734_v6 = vld [vmem:[%s914_s2] sm:$0xff]  ;;  %v524_v22 = vld [vmem:[%s919_s7 + $0x8] sm:$0xff] }
   0xf   : > { %768 = vset.pattern.permute.xlu2 %v793_v1  ;;  %v701_v3 = vld [vmem:[%s359_s16] sm:$0xf]  ;;  %v736_v4 = vld [vmem:[%s359_s16 + $0x4] sm:$0xf0]  ;;  %v735_v5 = vld [vmem:[%s359_s16 + $0x4] sm:$0xf] }
  0x10   : > { %v702_v7 = vor.u32 %v736_v4, %v701_v3  ;;  %v703_v8 = vld [vmem:[%s359_s16 + $0x8] sm:$0xf0]  ;;  %v715_v9 = vld [vmem:[%s369_s19] sm:$0xf]  ;;  %v739_v10 = vld [vmem:[%s369_s19 + $0x4] sm:$0xf0] }
  0x11   : > { %v706_v11 = vor.u32 %v735_v5, %v703_v8  ;;  %v716_v12 = vor.u32 %v739_v10, %v715_v9  ;;  %v738_v13 = vld [vmem:[%s369_s19 + $0x4] sm:$0xf]  ;;  %v717_v14 = vld [vmem:[%s369_s19 + $0x8] sm:$0xf0]  ;;  %s733_s16 = sshll.u32 %s926_s27, 5 }
  0x12   : > { %424 = vmatpush.bf16.msra.mxu0 %v702_v7  ;;  %v720_v16 = vor.u32 %v738_v13, %v717_v14  ;;  %v737_v17 = vld [vmem:[%s916_s4] sm:$0xff]  ;;  %s379_s19 = scalar_lea.vmem %s920_s8, %s733_s16 }
  0x13   : > { %438 = vmatpush.bf16.msra.mxu1 %v706_v11  ;;  %490 = vmatpush.bf16.msra.mxu2 %v716_v12  ;;  %v523_v19 = vld [vmem:[%s919_s7] sm:$0xff] }
  0x14   : > { %504 = vmatpush.bf16.msra.mxu3 %v720_v16  ;;  %527 = vperm.xlu2 %768, %v523_v19   ;;  %v740_v55 = vld [vmem:[%s918_s6] sm:$0xff] }
  0x15   : > { %707 = vmatmul.msk.bf16.vlgmr.msra.gmra.mxu0 %vm413_vm0, %v734_v6 }
  0x16   : > { %462 = vperm.xlu1 %767, %v454_v15   ;;  %395 = vperm.xlu0 %766, %v387_v18  }
  0x17   : > { %708 = vmatmul.msk.bf16.vlgmr.msra.gmra.mxu1 %vm413_vm0, %v734_v6  ;;  %721 = vmatmul.msk.bf16.vlgmr.msra.gmra.mxu2 %vm413_vm0, %v737_v17 }
  0x18   : > { %722 = vmatmul.msk.bf16.vlgmr.msra.gmra.mxu3 %vm413_vm0, %v737_v17 }
  0x1c   : > { %532 = vperm.xlu2 %768, %v524_v22  }
  0x6e   : > { %v528_v56 = vpop.permute.xlu2 %527 }
  0x76   : > { %v533_v63 = vpop.permute.xlu2 %532 }
  0x80   : > { %v391_v23 = vpop.permute.xlu0 %390  ;;  %v458_v24 = vpop.permute.xlu1 %457 }
  0x88   : > { %v396_v32 = vpop.permute.xlu0 %395  ;;  %v463_v35 = vpop.permute.xlu1 %462 }
  0x92   : > { %v426_v20 = vpop.f32.mrf.mxu0 }
  0x93   : > { %v427_v28 = vadd.f32 %v426_v20, %v391_v23 }
  0x94   : > { %v440_v21 = vpop.f32.mrf.mxu1 }
  0x95   : > { %v441_v31 = vadd.f32 %v440_v21, %v391_v23  ;;  %v445_v38 = vmax.f32 %v427_v28, 0.0 }
  0x97   : > { %v446_v42 = vmax.f32 %v441_v31, 0.0 }
  0x9a   : > { %v492_v25 = vpop.f32.mrf.mxu2  ;;  %v428_v27 = vpop.f32.mrf.mxu0 }
  0x9b   : > { %v506_v26 = vpop.f32.mrf.mxu3  ;;  %v493_v29 = vadd.f32 %v492_v25, %v458_v24  ;;  %v429_v34 = vadd.f32 %v428_v27, %v396_v32 }
  0x9c   : > { %v442_v30 = vpop.f32.mrf.mxu1  ;;  %v507_v33 = vadd.f32 %v506_v26, %v458_v24 }
  0x9d   : > { %v443_v36 = vadd.f32 %v442_v30, %v396_v32  ;;  %v511_v39 = vmax.f32 %v493_v29, 0.0  ;;  %v447_v45 = vmax.f32 %v429_v34, 0.0 }
  0x9e   : > { %v512_v43 = vmax.f32 %v507_v33, 0.0 }
  0x9f   : > { %v448_v47 = vmax.f32 %v443_v36, 0.0  ;;  %v515_v49 = vadd.f32 %v511_v39, %v445_v38 }
  0xa0   : > { %v516_v51 = vadd.f32 %v512_v43, %v446_v42 }
  0xa2   : > { %v494_v37 = vpop.f32.mrf.mxu2 }
  0xa3   : > { %v495_v40 = vadd.f32 %v494_v37, %v463_v35  ;;  %v508_v41 = vpop.f32.mrf.mxu3 }
  0xa4   : > { %v509_v44 = vadd.f32 %v508_v41, %v463_v35 }
  0xa5   : > { %v513_v46 = vmax.f32 %v495_v40, 0.0 }
  0xa6   : > { %v514_v48 = vmax.f32 %v509_v44, 0.0 }
  0xa7   : > { %v517_v50 = vadd.f32 %v513_v46, %v447_v45 }
  0xa8   : > { %v518_v52 = vadd.f32 %v514_v48, %v448_v47 }
  0xa9   : > { %v519_v53 = vpack.c.bf16 %v517_v50, %v515_v49 }
  0xaa   : > { %v520_v54 = vpack.c.bf16 %v518_v52, %v516_v51 }
  0xab   : > { %550 = vmatpush.bf16.msrb.mxu0 %v519_v53 }
  0xac   : > { %564 = vmatpush.bf16.msrb.mxu1 %v520_v54 }
  0xae   : > { %727 = vmatmul.msk.bf16.vlgmr.msrb.gmra.mxu0 %vm413_vm0, %v740_v55 }
  0xaf   : > { %728 = vmatmul.msk.bf16.vlgmr.msrb.gmra.mxu1 %vm413_vm0, %v740_v55 }
 0x12b   : > { %v552_v57 = vpop.f32.mrf.mxu0 }
 0x12c   : > { %v553_v58 = vadd.f32 %v552_v57, %v528_v56  ;;  %v566_v59 = vpop.f32.mrf.mxu1 }
 0x12d   : > { %v567_v60 = vadd.f32 %v566_v59, %v528_v56 }
 0x12e   : > { %v571_v61 = vmax.f32 %v553_v58, 0.0 }
 0x12f   : > { %v572_v62 = vmax.f32 %v567_v60, 0.0 }
 0x130   : > { %575 = vst [vmem:[%s379_s19] sm:$0xff] %v571_v61 }
 0x131   : > { %576 = vst [vmem:[%s379_s19 + $0x8] sm:$0xff] %v572_v62 }
 0x133   : > { %v554_v0 = vpop.f32.mrf.mxu0 }
 0x134   : > { %v555_v1 = vadd.f32 %v554_v0, %v533_v63  ;;  %v568_v2 = vpop.f32.mrf.mxu1 }
 0x135   : > { %v569_v3 = vadd.f32 %v568_v2, %v533_v63 }
 0x136   : > { %v573_v4 = vmax.f32 %v555_v1, 0.0 }
 0x137   : > { %v574_v5 = vmax.f32 %v569_v3, 0.0 }
 0x138   : > { %577 = vst [vmem:[%s379_s19 + $0x10] sm:$0xff] %v573_v4 }
 0x139   : > { %578 = vst [vmem:[%s379_s19 + $0x18] sm:$0xff] %v574_v5 }
 0x13a PF: > { %s18_s29 = sadd.s32 1, %s791_s29   ;;  %s921_s27 = smov %s787_s28 }
 0x13b   : > { %p15_p5 = scmp.ge.s32.totalorder %s18_s29, 4   ;;  %s922_s28 = smov %s924_s30 }
 0x13d   :  { %17 = sbr.rel (!%p15_p5) target bundleno = 2 (0x2), region = 85 }

// kernel: _lambda_.5
= control target key start
LH: loop header
LB: loop body
LE: loop exit
PB: predicated region body
PF: predicated region fallthrough
CT: control target
= control target key end

     0   :  { %s680_s17 = smov 0   ;;  %s760_s0 = inlined_call_operand.vmem [shape: bf16[2,16,256], index: 0, kind: input, shape index: {}]   ;;  %s761_s1 = inlined_call_operand.vmem [shape: bf16[32,16], index: 1, kind: input, shape index: {}]   ;;  %s762_s2 = inlined_call_operand.vmem [shape: f32[32,1], index: 2, kind: input, shape index: {}]   ;;  %s763_s3 = inlined_call_operand.<no memory space> [shape: f32[1,1], index: 3, kind: input, shape index: {}]   ;;  %s764_s4 = inlined_call_operand.vmem [shape: bf16[2,16,256], index: 4, kind: output, shape index: {}]  }
   0x1   :  { %9 = sst [smem:[#allocation2]] %s763_s3 }
   0x2 LB: > { %s579_s18 = sadd.s32 4294967295, %s649_s17   ;;  %p583_p0 = scmp.ge.s32.totalorder %s649_s17, 1  ;;  %s649_s17 = sphi %s680_s17, %s15_s17  }
   0x3   : > { %p163_p1 = scmp.lt.s32.totalorder %s649_s17, 3 }
   0x5   : > { %p164_p2 = pnand %p583_p0, %p163_p1 }
   0x6   : > { %p189_p3 = scmp.lt.s32.totalorder (!%p164_p2), %s579_s18, 1  ;;  %s506_s8 = sld [smem:[#allocation2]] (!%p164_p2) }
   0x7   : > { %167 = sbr.rel (%p164_p2) target bundleno = 483 (0x1e3), region = 36 }
   0xc   : > { %v213_v0 = vld [vmem:[%s762_s2 + $0x18] sm:$0xff]  ;;  %v211_v1 = vld [vmem:[%s762_s2 + $0x8] sm:$0xff]  ;;  %v651_v2 = vmov 0   ;;  %s766_s18 = smov (!%p189_p3, %s579_s18), 1  ;;  %v210_v8 = vld [vmem:[%s762_s2] sm:$0xff]  ;;  %vm254_vm0 = vcmask 130048  }
   0xd   : > { %630 = vset.pattern.permute.xlu1 %v651_v2  ;;  %629 = vset.pattern.permute.xlu0 %v651_v2  ;;  %s614_s22 = sshll.u32 %s766_s18, 4  ;;  %v618_v10 = vld [vmem:[%s761_s1] sm:$0xff]  ;;  %v212_v11 = vld [vmem:[%s762_s2 + $0x10] sm:$0xff]  ;;  %v619_v12 = vld [vmem:[%s761_s1 + $0x8] sm:$0xff]  ;;  %vm449_vm13 = vcmask 64512  }
   0xe   : > { %231 = vperm.xlu1 %630, %v213_v0   ;;  %221 = vperm.xlu0 %629, %v211_v1   ;;  %s702_s25 = scalar_lea.vmem %s760_s0, %s614_s22  ;;  %s198_s11 = scalar_lea.vmem %s764_s4, %s614_s22 }
   0xf   : > { %v598_v3 = vld [vmem:[%s702_s25] sm:$0xf]  ;;  %v617_v4 = vld [vmem:[%s702_s25 + $0x4] sm:$0xf0]  ;;  %v616_v5 = vld [vmem:[%s702_s25 + $0x4] sm:$0xf] }
  0x10   : > { %v599_v6 = vor.u32 %v617_v4, %v598_v3  ;;  %v600_v7 = vld [vmem:[%s702_s25 + $0x8] sm:$0xf0] }
  0x11   : > { %v603_v9 = vor.u32 %v616_v5, %v600_v7 }
  0x12   : > { %268 = vmatpush.bf16.msra.mxu0 %v599_v6 }
  0x13   : > { %287 = vmatpush.bf16.msra.mxu1 %v603_v9 }
  0x15   : > { %604 = vmatmul.msk.bf16.vlgmr.msra.gmra.mxu0 %vm254_vm0, %v618_v10 }
  0x16   : > { %216 = vperm.xlu1 %630, %v210_v8   ;;  %226 = vperm.xlu0 %629, %v212_v11  }
  0x17   : > { %606 = vmatmul.msk.bf16.vlgmr.msra.gmra.mxu1 %vm254_vm0, %v618_v10 }
  0x25   : > { %605 = vmatmul.msk.bf16.gmra.mxu0 %vm254_vm0, %v619_v12 }
  0x27   : > { %607 = vmatmul.msk.bf16.gmra.mxu1 %vm254_vm0, %v619_v12 }
  0x80   : > { %v232_v13 = vpop.permute.xlu1 %231  ;;  %v222_v24 = vpop.permute.xlu0 %221 }
  0x88   : > { %v217_v14 = vpop.permute.xlu1 %216 }
  0x92   : > { %v270_v15 = vpop.f32.mrf.mxu0 }
  0x93   : > { %v720_v16 = vadd.f32 %v270_v15, %v217_v14 }
  0x94   : > { %v289_v17 = vpop.f32.mrf.mxu1 }
  0x95   : > { %v722_v18 = vadd.f32 %v289_v17, %v217_v14  ;;  %v299_v19 = vmul.f32 %v720_v16, %v720_v16 }
  0x97   : > { %v300_v20 = vmul.f32 %v722_v18, %v722_v18  ;;  %v301_v21 = vrot.slane %v299_v19, 4 }
  0x99   : > { %v307_v22 = vrot.slane %v300_v20, 4  ;;  %v302_v23 = vadd.f32 %v301_v21, %v299_v19 }
  0x9a   : > { %v272_v26 = vpop.f32.mrf.mxu0 }
  0x9b   : > { %v308_v25 = vadd.f32 %v307_v22, %v300_v20  ;;  %v303_v27 = vrot.slane %v302_v23, 2  ;;  %v728_v28 = vadd.f32 %v272_v26, %v222_v24 }
  0x9c   : > { %v291_v29 = vpop.f32.mrf.mxu1 }
  0x9d   : > { %v309_v30 = vrot.slane %v308_v25, 2  ;;  %v730_v31 = vadd.f32 %v291_v29, %v222_v24  ;;  %v304_v32 = vadd.f32 %v303_v27, %v302_v23  ;;  %v337_v33 = vmul.f32 %v728_v28, %v728_v28 }
  0x9f   : > { %v310_v34 = vadd.f32 %v309_v30, %v308_v25  ;;  %v338_v35 = vmul.f32 %v730_v31, %v730_v31  ;;  %v305_v36 = vrot.slane %v304_v32, 1  ;;  %v339_v37 = vrot.slane %v337_v33, 4 }
  0xa1   : > { %v311_v38 = vrot.slane %v310_v34, 1  ;;  %v345_v39 = vrot.slane %v338_v35, 4  ;;  %v306_v40 = vadd.f32 %v305_v36, %v304_v32  ;;  %v340_v41 = vadd.f32 %v339_v37, %v337_v33 }
  0xa2   : > { %v736_v44 = vpop.f32.mrf.mxu0 }
  0xa3   : > { %v312_v42 = vadd.f32 %v311_v38, %v310_v34  ;;  %v346_v43 = vadd.f32 %v345_v39, %v338_v35  ;;  %v313_v45 = vadd.f32 1e-12, %v306_v40  ;;  %v341_v46 = vrot.slane %v340_v41, 2  ;;  %v227_v34 = vpop.permute.xlu0 %226 }
  0xa4   : > { %v738_v47 = vpop.f32.mrf.mxu1  ;;  %v276_v36 = vadd.f32 %v736_v44, %v227_v34 }
  0xa5   : > { %v314_v48 = vadd.f32 1e-12, %v312_v42  ;;  %v347_v49 = vrot.slane %v346_v43, 2  ;;  %631 = vrsqrt.f32 %v313_v45  ;;  %v342_v50 = vadd.f32 %v341_v46, %v340_v41 }
  0xa6   : > { %vm321_vm4 = vweird.f32 %v313_v45  ;;  %v295_v38 = vadd.f32 %v738_v47, %v227_v34 }
  0xa7   : > { %633 = vrsqrt.f32 %v314_v48  ;;  %v348_v51 = vadd.f32 %v347_v49, %v346_v43  ;;  %v343_v52 = vrot.slane %v342_v50, 1  ;;  %vm331_vm7 = vweird.f32 %v314_v48 }
  0xa9   : > { %v349_v53 = vrot.slane %v348_v51, 1  ;;  %v344_v54 = vadd.f32 %v343_v52, %v342_v50 }
  0xaa   : > { %v277_v56 = vpop.f32.mrf.mxu0 }
  0xab   : > { %v350_v55 = vadd.f32 %v349_v53, %v348_v51  ;;  %v632_v57 = vpop.eup %631  ;;  %v351_v58 = vadd.f32 1e-12, %v344_v54  ;;  %v740_v59 = vadd.f32 %v277_v56, %v232_v13 }
  0xac   : > { %v296_v60 = vpop.f32.mrf.mxu1  ;;  %v316_v0 = vmul.f32 %v632_v57, %v313_v45  ;;  %vm322_vm1 = vweird.f32 %v632_v57 }
  0xad   : > { %v634_v61 = vpop.eup %633  ;;  %v352_v62 = vadd.f32 1e-12, %v350_v55  ;;  %v297_v63 = vadd.f32 %v296_v60, %v232_v13  ;;  %635 = vrsqrt.f32 %v351_v58  ;;  %vm323_vm6 = vmor %vm321_vm4, %vm322_vm1  ;;  %vm359_vm8 = vweird.f32 %v351_v58 }
  0xae   : > { %v326_v1 = vmul.f32 %v634_v61, %v314_v48  ;;  %v317_v2 = vmul.f32 %v632_v57, %v316_v0  ;;  %vm332_vm2 = vweird.f32 %v634_v61 }
  0xaf   : > { %637 = vrsqrt.f32 %v352_v62  ;;  %v400_v3 = vadd.f32 %v297_v63, %v740_v59  ;;  %vm333_vm9 = vmor %vm331_vm7, %vm332_vm2  ;;  %vm369_vm11 = vweird.f32 %v352_v62 }
  0xb0   : > { %v327_v4 = vmul.f32 %v634_v61, %v326_v1  ;;  %v318_v5 = vmul.f32 0.5, %v317_v2 }
  0xb1   : > { %401 = vadd.xlane.f32.xlu0 %v400_v3 }
  0xb2   : > { %v328_v6 = vmul.f32 0.5, %v327_v4  ;;  %v319_v11 = vsub.f32 1.5, %v318_v5  ;;  %v511_v4 = vstv %s506_s8 }
  0xb3   : > { %v636_v7 = vpop.eup %635 }
  0xb4   : > { %v354_v9 = vmul.f32 %v636_v7, %v351_v58  ;;  %v329_v14 = vsub.f32 1.5, %v328_v6  ;;  %v320_v19 = vmul.f32 %v632_v57, %v319_v11  ;;  %vm360_vm3 = vweird.f32 %v636_v7 }
  0xb5   : > { %v638_v8 = vpop.eup %637  ;;  %vm361_vm10 = vmor %vm359_vm8, %vm360_vm3 }
  0xb6   : > { %v364_v10 = vmul.f32 %v638_v8, %v352_v62  ;;  %v355_v12 = vmul.f32 %v636_v7, %v354_v9  ;;  %v330_v21 = vmul.f32 %v634_v61, %v329_v14  ;;  %vm370_vm5 = vweird.f32 %v638_v8 }
  0xb7   : > { %v324_v25 = vsel %vm323_vm6, %v632_v57, %v320_v19  ;;  %vm371_vm12 = vmor %vm369_vm11, %vm370_vm5 }
  0xb8   : > { %v365_v15 = vmul.f32 %v638_v8, %v364_v10  ;;  %v356_v13 = vmul.f32 0.5, %v355_v12  ;;  %v334_v27 = vsel %vm333_vm9, %v634_v61, %v330_v21  ;;  %v335_v33 = vmul.f32 %v324_v25, %v720_v16  ;;  %v200_v61 = vld [vmem:[%s702_s25] sm:$0xff] }
  0xb9   : > { %v336_v35 = vmul.f32 %v334_v27, %v722_v18  ;;  %v202_v5 = vunpack.c.l.bf16 %v200_v61 }
  0xba   : > { %v366_v17 = vmul.f32 0.5, %v365_v15  ;;  %v357_v20 = vsub.f32 1.5, %v356_v13  ;;  %v201_v15 = vld [vmem:[%s702_s25 + $0x8] sm:$0xff] }
  0xbc   : > { %v367_v22 = vsub.f32 1.5, %v366_v17  ;;  %v358_v23 = vmul.f32 %v636_v7, %v357_v20 }
  0xbe   : > { %v368_v24 = vmul.f32 %v638_v8, %v367_v22  ;;  %v362_v26 = vsel %vm361_vm10, %v636_v7, %v358_v23  ;;  %v203_v7 = vunpack.c.h.bf16 %v200_v61  ;;  %v204_v22 = vunpack.c.l.bf16 %v201_v15 }
  0xbf   : > { %v373_v29 = vmul.f32 %v362_v26, %v728_v28  ;;  %v397_v28 = vadd.f32 %v295_v38, %v276_v36 }
  0xc0   : > { %v372_v30 = vsel %vm371_vm12, %v638_v8, %v368_v24  ;;  %v205_v24 = vunpack.c.h.bf16 %v201_v15 }
  0xc1   : > { %v374_v32 = vmul.f32 %v372_v30, %v730_v31  ;;  %418 = vmatpush.xpose.msra.mxu2 %v373_v29 }
  0xc3   : > { %441 = vmatpush.xpose.msra.mxu3 %v374_v32  ;;  %v375_v37 = vadd.f32 %v374_v32, %v373_v29 }
  0xc4   : > { %419 = vmatmul.f32.vlgmr.msra.gmra.mxu2 %v276_v36 }
  0xc5   : > { %471 = vmatpush.msrb.mxu2 %v335_v33  ;;  %376 = vadd.xlane.f32.xlu2 %v375_v37 }
  0xc6   : > { %442 = vmatmul.f32.vlgmr.msra.gmra.mxu3 %v295_v38 }
  0xc7   : > { %494 = vmatpush.msrb.mxu3 %v336_v35 }
  0xcc   : > { %422 = vmatmul.f32.gmra.mxu2 %v740_v59 }
  0xcd   : > { %398 = vadd.xlane.f32.xlu2 %v397_v28 }
  0xce   : > { %445 = vmatmul.f32.gmra.mxu3 %v297_v63 }
 0x124   : > { %v402_v11 = vpop.xlane.xlu0 %401 }
 0x138   : > { %v377_v42 = vpop.xlane.xlu2 %376 }
 0x139   : > { %v378_v43 = vadd.f32 1e-06, %v377_v42 }
 0x13b   : > { %v379_v44 = vmul.f32 %v378_v43, %v335_v33  ;;  %v380_v45 = vmul.f32 %v378_v43, %v336_v35 }
 0x13d   : > { %v381_v46 = vrot.slane %v379_v44, 4  ;;  %v387_v47 = vrot.slane %v380_v45, 4 }
 0x13f   : > { %v382_v48 = vadd.f32 %v381_v46, %v379_v44  ;;  %v388_v49 = vadd.f32 %v387_v47, %v380_v45 }
 0x140   : > { %v399_v60 = vpop.xlane.xlu2 %398 }
 0x141   : > { %v383_v50 = vrot.slane %v382_v48, 2  ;;  %v389_v51 = vrot.slane %v388_v49, 2 }
 0x143   : > { %v384_v52 = vadd.f32 %v383_v50, %v382_v48  ;;  %v390_v53 = vadd.f32 %v389_v51, %v388_v49 }
 0x145   : > { %v385_v54 = vrot.slane %v384_v52, 1  ;;  %v391_v55 = vrot.slane %v390_v53, 1 }
 0x147   : > { %v420_v16 = vpop.f32.mrf.mxu2  ;;  %v386_v56 = vadd.f32 %v385_v54, %v384_v52  ;;  %v392_v57 = vadd.f32 %v391_v55, %v390_v53 }
 0x149   : > { %v443_v31 = vpop.f32.mrf.mxu3  ;;  %v393_v58 = vadd.f32 256.0, %v386_v56  ;;  %v394_v59 = vadd.f32 256.0, %v392_v57 }
 0x14a   : > { %v444_v18 = vadd.f32 %v443_v31, %v420_v16 }
 0x14b   : > { %639 = vrcp.f32 %v393_v58 }
 0x14c   : > { %608 = vmatmul.msk.f32.vlgmr.msrb.gmra.mxu2 %vm449_vm13, %v444_v18  ;;  %610 = vmatmul.msk.f32.vlgmr.msrb.gmra.mxu3 %vm449_vm13, %v444_v18  ;;  %641 = vrcp.f32 %v394_v59 }
 0x14f   : > { %v423_v39 = vpop.f32.mrf.mxu2 }
 0x151   : > { %v446_v40 = vpop.f32.mrf.mxu3  ;;  %v640_v0 = vpop.eup %639 }
 0x152   : > { %v447_v41 = vadd.f32 %v446_v40, %v423_v39  ;;  %v642_v3 = vpop.eup %641 }
 0x154   : > { %609 = vmatmul.msk.f32.gmra.mxu2 %vm449_vm13, %v447_v41  ;;  %611 = vmatmul.msk.f32.gmra.mxu3 %vm449_vm13, %v447_v41 }
 0x1cf   : > { %v473_v62 = vpop.f32.mrf.mxu2  ;;  %v496_v63 = vpop.f32.mrf.mxu3 }
 0x1d0   : > { %v502_v1 = vadd.f32 %v473_v62, %v399_v60  ;;  %v503_v2 = vadd.f32 %v496_v63, %v399_v60 }
 0x1d2   : > { %v507_v6 = vmul.f32 %v640_v0, %v502_v1  ;;  %v508_v8 = vmul.f32 %v642_v3, %v503_v2 }
 0x1d4   : > { %v512_v9 = vmul.f32 %v511_v4, %v507_v6  ;;  %v513_v10 = vmul.f32 %v511_v4, %v508_v8 }
 0x1d6   : > { %v516_v12 = vadd.f32 %v512_v9, %v202_v5  ;;  %v517_v14 = vadd.f32 %v513_v10, %v203_v7 }
 0x1d7   : > { %v476_v13 = vpop.f32.mrf.mxu2  ;;  %v499_v17 = vpop.f32.mrf.mxu3 }
 0x1d8   : > { %v520_v19 = vpack.c.bf16 %v517_v14, %v516_v12  ;;  %v504_v20 = vadd.f32 %v476_v13, %v402_v11  ;;  %v505_v21 = vadd.f32 %v499_v17, %v402_v11 }
 0x1da   : > { %522 = vst [vmem:[%s198_s11] sm:$0xff] %v520_v19  ;;  %v509_v23 = vmul.f32 %v640_v0, %v504_v20  ;;  %v510_v25 = vmul.f32 %v642_v3, %v505_v21 }
 0x1dc   : > { %v514_v26 = vmul.f32 %v511_v4, %v509_v23  ;;  %v515_v27 = vmul.f32 %v511_v4, %v510_v25 }
 0x1de   : > { %v518_v29 = vadd.f32 %v514_v26, %v204_v22  ;;  %v519_v30 = vadd.f32 %v515_v27, %v205_v24 }
 0x1e0   : > { %v521_v32 = vpack.c.bf16 %v519_v30, %v518_v29 }
 0x1e2   : > { %523 = vst [vmem:[%s198_s11 + $0x8] sm:$0xff] %v521_v32 }
 0x1e3 PF: > { %s15_s17 = sadd.s32 1, %s649_s17  }
 0x1e4   : > { %p12_p4 = scmp.ge.s32.totalorder %s15_s17, 4  }
 0x1e6   :  { %14 = sbr.rel (!%p12_p4) target bundleno = 2 (0x2), region = 66 }

// kernel: _lambda_.4
= control target key start
LH: loop header
LB: loop body
LE: loop exit
PB: predicated region body
PF: predicated region fallthrough
CT: control target
= control target key end

     0   :  { %s1423_s15 = smov 0   ;;  %s1623_s0 = inlined_call_operand.vmem [shape: f32[2,16,320], index: 0, kind: input, shape index: {}]   ;;  %s1624_s1 = inlined_call_operand.vmem [shape: f32[2,256], index: 1, kind: input, shape index: {}]   ;;  %s1625_s2 = inlined_call_operand.vmem [shape: f32[9,16,16], index: 2, kind: input, shape index: {}]   ;;  %s1626_s3 = inlined_call_operand.vmem [shape: f32[16,1], index: 3, kind: input, shape index: {}]   ;;  %s1627_s4 = inlined_call_operand.vmem [shape: bf16[2,16,256], index: 4, kind: output, shape index: {}]  }
   0x1 LB: > { %s1145_s16 = sadd.s32 4294967295, %s1380_s15   ;;  %p1149_p0 = scmp.ge.s32.totalorder %s1380_s15, 1  ;;  %s1380_s15 = sphi %s1423_s15, %s14_s15  }
   0x2   : > { %p162_p1 = scmp.lt.s32.totalorder %s1380_s15, 3 }
   0x4   : > { %p163_p2 = pnand %p1149_p0, %p162_p1 }
   0x5   : > { %p188_p3 = scmp.lt.s32.totalorder (!%p163_p2), %s1145_s16, 1  ;;  %s1382_s19 = smov (!%p163_p2), 17  }
   0x6   : > { %166 = sbr.rel (%p163_p2) target bundleno = 519 (0x207), region = 36  ;;  %s1383_s20 = smov (!%p163_p2), 15  }
   0x7   : > { %s1384_s21 = smov (!%p163_p2), 31   ;;  %s1385_s26 = smov (!%p163_p2), 33  }
   0x8   : > { %s1386_s27 = smov (!%p163_p2), 112   ;;  %s1387_s28 = smov (!%p163_p2), 47  }
   0x9   : > { %s1388_s29 = smov (!%p163_p2), 49   ;;  %s1389_s30 = smov (!%p163_p2), 113  }
   0xa   : > { %s1390_s5 = smov (!%p163_p2), 111   ;;  %s1391_s6 = smov (!%p163_p2), 97  }
   0xb   : > { %v198_v0 = vld [vmem:[%s1624_s1] sm:$0xf]  ;;  %s1629_s16 = smov (!%p188_p3, %s1145_s16), 1  ;;  %vm218_vm0 = vcmask 121856   ;;  %vm405_vm1 = vcmask 138240   ;;  %vm506_vm2 = vcmask 252928  }
   0xc   : > { %v393_v1 = vperm.slane %v198_v0, 1  ;;  %v206_v2 = vperm.slane %v198_v0, 0  ;;  %v394_v5 = vperm.slane %v198_v0, 3  ;;  %v207_v6 = vperm.slane %v198_v0, 2  ;;  %s1212_s22 = smul.u32 48, %s1629_s16  ;;  %s1392_s7 = smov 96  }
   0xd   : > { %vm252_vm3 = vcmask 916480   ;;  %vm687_vm4 = vcmask 269312   ;;  %vm788_vm5 = vcmask 384000   ;;  %s1393_s8 = smov 95   ;;  %s1394_s9 = smov 81   ;;  %vm261_vm6 = vcmask 130048  }
   0xe   : > { %v397_v3 = vperm.slane %v393_v1, 1  ;;  %v210_v4 = vperm.slane %v206_v2, 0  ;;  %v1436_v7 = vperm.slane %v394_v5, 1  ;;  %v211_v8 = vperm.slane %v207_v6, 0  ;;  %s192_s25 = scalar_lea.vmem %s1623_s0, %s1212_s22  ;;  %s1395_s10 = smov 80  }
   0xf   : > { %v1443_v9 = vld [vmem:[%s192_s25 + $0x18] sm:$0xff]  ;;  %v1445_v10 = vld [vmem:[%s192_s25 + $0x20] sm:$0xff]  ;;  %v1454_v13 = vld [vmem:[%s192_s25 + $0x28] sm:$0xff]  ;;  %vm969_vm7 = vcmask 400384   ;;  %s1396_s17 = smov 79   ;;  %vm332_vm8 = vcmask 924672  }
  0x10   : > { %401 = vrot.lane.b32.xlu1 %v397_v3, %s1382_s19  ;;  %214 = vrot.lane.b32.xlu0 %v210_v4, %s1383_s20  ;;  %v1449_v11 = vpack.i.bf16 %v1445_v10, %v1443_v9  ;;  %v1452_v12 = vld [vmem:[%s192_s25] sm:$0xff]  ;;  %v1457_v14 = vld [vmem:[%s192_s25 + $0x8] sm:$0xff]  ;;  %vm437_vm9 = vcmask 908288   ;;  %vm538_vm10 = vcmask 793600   ;;  %vm618_vm11 = vcmask 785408  }
  0x11   : > { %502 = vrot.lane.b32.xlu2 %v210_v4, %s1384_s21  ;;  %v1459_v15 = vld [vmem:[%s192_s25 + $0x10] sm:$0xff]  ;;  %v1463_v16 = vpack.i.bf16 %v1452_v12, %v1454_v13  ;;  %vm719_vm12 = vcmask 777216   ;;  %vm820_vm13 = vcmask 662528   ;;  %vm900_vm14 = vcmask 654336  }
  0x12   : > { %v1467_v17 = vpack.i.bf16 %v1459_v15, %v1457_v14  ;;  %vm1001_vm15 = vcmask 646144  }
  0x18   : > { %403 = vrot.lane.b32.xlu1 %v1436_v7, %s1382_s19  ;;  %216 = vrot.lane.b32.xlu0 %v211_v8, %s1383_s20 }
  0x19   : > { %504 = vrot.lane.b32.xlu2 %v211_v8, %s1384_s21 }
  0x20   : > { %683 = vrot.lane.b32.xlu0 %v397_v3, %s1385_s26  ;;  %685 = vrot.lane.b32.xlu1 %v1436_v7, %s1385_s26 }
  0x21   : > { %1238 = vrot.lane.b32.xlu2 %v1449_v11, %s1386_s27 }
  0x28   : > { %1243 = vrot.lane.b32.xlu0 %v1463_v16, %s1386_s27  ;;  %1248 = vrot.lane.b32.xlu1 %v1467_v17, %s1386_s27 }
  0x29   : > { %784 = vrot.lane.b32.xlu2 %v210_v4, %s1387_s28 }
  0x30   : > { %786 = vrot.lane.b32.xlu0 %v211_v8, %s1387_s28  ;;  %965 = vrot.lane.b32.xlu1 %v397_v3, %s1388_s29 }
  0x6b   : > { %v503_v20 = vpop.permute.xlu2 %502 }
  0x6c   : > { %v514_v46 = vmul.f32 %v503_v20, %v1443_v9  ;;  %v511_v48 = vmul.f32 %v503_v20, %v1452_v12 }
  0x73   : > { %v505_v36 = vpop.permute.xlu2 %504 }
  0x74   : > { %v507_v42 = vsel %vm506_vm2, %v503_v20, %v505_v36  ;;  %v516_v49 = vmul.f32 %v505_v36, %v1454_v13  ;;  %v513_v60 = vmul.f32 %v505_v36, %v1459_v15  ;;  %v1154_v36 = vld [vmem:[%s1625_s2 + $0x18] sm:$0xff] }
  0x75   : > { %v515_v47 = vmul.f32 %v507_v42, %v1445_v10  ;;  %v512_v59 = vmul.f32 %v507_v42, %v1457_v14 }
  0x76   : > { %v1277_v52 = vpack.i.bf16 %v511_v48, %v516_v49 }
  0x77   : > { %v1287_v51 = vpack.i.bf16 %v515_v47, %v514_v46  ;;  %v1302_v3 = vpack.i.bf16 %v513_v60, %v512_v59 }
  0x7b   : > { %v1239_v53 = vpop.permute.xlu2 %1238 }
  0x7c   : > { %v1241_v55 = vunpack.i.h.bf16 %v1239_v53  ;;  %v1240_v56 = vunpack.i.l.bf16 %v1239_v53 }
  0x7e   : > { %v255_v62 = vsel %vm252_vm3, %v1240_v56, %v1241_v55 }
  0x7f   : > { %282 = vmatpush.msra.mxu0 %v255_v62  ;;  %1208 = vmatpush.msra.mxu2 %v255_v62 }
  0x82   : > { %v402_v18 = vpop.permute.xlu1 %401  ;;  %v215_v19 = vpop.permute.xlu0 %214 }
  0x83   : > { %v223_v26 = vmul.f32 %v215_v19, %v1452_v12  ;;  %v226_v27 = vmul.f32 %v215_v19, %v1443_v9  ;;  %v410_v37 = vmul.f32 %v402_v18, %v1452_v12  ;;  %v413_v38 = vmul.f32 %v402_v18, %v1443_v9  ;;  %v785_v8 = vpop.permute.xlu2 %784 }
  0x8a   : > { %v217_v21 = vpop.permute.xlu0 %216  ;;  %v404_v23 = vpop.permute.xlu1 %403 }
  0x8b   : > { %v219_v22 = vsel %vm218_vm0, %v215_v19, %v217_v21  ;;  %v225_v25 = vmul.f32 %v217_v21, %v1459_v15  ;;  %v228_v29 = vmul.f32 %v217_v21, %v1454_v13  ;;  %v406_v31 = vsel %vm405_vm1, %v402_v18, %v404_v23 }
  0x8c   : > { %v224_v24 = vmul.f32 %v219_v22, %v1457_v14  ;;  %v227_v28 = vmul.f32 %v219_v22, %v1445_v10  ;;  %v411_v34 = vmul.f32 %v406_v31, %v1457_v14  ;;  %v412_v35 = vmul.f32 %v404_v23, %v1459_v15 }
  0x8d   : > { %v1252_v32 = vpack.i.bf16 %v223_v26, %v228_v29  ;;  %v414_v39 = vmul.f32 %v406_v31, %v1445_v10  ;;  %v415_v40 = vmul.f32 %v404_v23, %v1454_v13  ;;  %v793_v22 = vmul.f32 %v785_v8, %v1452_v12 }
  0x8e   : > { %v1267_v30 = vpack.i.bf16 %v225_v25, %v224_v24  ;;  %v1262_v33 = vpack.i.bf16 %v227_v28, %v226_v27  ;;  %v1282_v43 = vpack.i.bf16 %v412_v35, %v411_v34  ;;  %v796_v23 = vmul.f32 %v785_v8, %v1443_v9 }
  0x8f   : > { %1253 = vrot.lane.b32.xlu2 %v1252_v32, %s1389_s30  ;;  %v1257_v44 = vpack.i.bf16 %v410_v37, %v415_v40  ;;  %v1272_v45 = vpack.i.bf16 %v414_v39, %v413_v38 }
  0x90   : > { %1268 = vrot.lane.b32.xlu0 %v1267_v30, %s1389_s30  ;;  %1263 = vrot.lane.b32.xlu1 %v1262_v33, %s1389_s30  ;;  %s1207_s30 = sshll.u32 %s1629_s16, 4 }
  0x92   : > { %v684_v41 = vpop.permute.xlu0 %683  ;;  %v686_v50 = vpop.permute.xlu1 %685 }
  0x93   : > { %v688_v2 = vsel %vm687_vm4, %v684_v41, %v686_v50  ;;  %v695_v4 = vmul.f32 %v684_v41, %v1443_v9  ;;  %v692_v6 = vmul.f32 %v684_v41, %v1452_v12  ;;  %v694_v26 = vmul.f32 %v686_v50, %v1459_v15 }
  0x94   : > { %v696_v5 = vmul.f32 %v688_v2, %v1445_v10  ;;  %v693_v25 = vmul.f32 %v688_v2, %v1457_v14 }
  0x96   : > { %v1322_v19 = vpack.i.bf16 %v696_v5, %v695_v4  ;;  %v1327_v30 = vpack.i.bf16 %v694_v26, %v693_v25 }
  0x97   : > { %1258 = vrot.lane.b32.xlu2 %v1257_v44, %s1390_s5 }
  0x98   : > { %1283 = vrot.lane.b32.xlu0 %v1282_v43, %s1390_s5  ;;  %1273 = vrot.lane.b32.xlu1 %v1272_v45, %s1390_s5 }
  0x9a   : > { %v1244_v54 = vpop.permute.xlu0 %1243  ;;  %v1249_v61 = vpop.permute.xlu1 %1248 }
  0x9b   : > { %v1245_v57 = vunpack.i.l.bf16 %v1244_v54  ;;  %v1246_v58 = vunpack.i.h.bf16 %v1244_v54  ;;  %v1250_v0 = vunpack.i.l.bf16 %v1249_v61  ;;  %v1251_v34 = vunpack.i.h.bf16 %v1249_v61 }
  0x9d   : > { %v256_v63 = vsel %vm252_vm3, %v1241_v55, %v1245_v57  ;;  %v253_v1 = vsel %vm252_vm3, %v1246_v58, %v1250_v0  ;;  %v254_v35 = vsel %vm252_vm3, %v1250_v0, %v1251_v34 }
  0x9e   : > { %305 = vmatpush.msra.mxu1 %v256_v63  ;;  %1210 = vmatpush.msra.mxu3 %v256_v63 }
  0x9f   : > { %967 = vrot.lane.b32.xlu2 %v1436_v7, %s1388_s29  ;;  %283 = vmatpush.msra.mxu0 %v253_v1  ;;  %v697_v7 = vmul.f32 %v686_v50, %v1454_v13 }
  0xa0   : > { %1288 = vrot.lane.b32.xlu0 %v1287_v51, %s1391_s6  ;;  %1278 = vrot.lane.b32.xlu1 %v1277_v52, %s1391_s6 }
  0xa1   : > { %1209 = vmatpush.msra.mxu2 %v253_v1  ;;  %v1312_v20 = vpack.i.bf16 %v692_v6, %v697_v7  ;;  %306 = vmatpush.msra.mxu1 %v254_v35  ;;  %v1163_v6 = vld [vmem:[%s1625_s2 + $0x20] sm:$0xff] }
  0xa2   : > { %v787_v18 = vpop.permute.xlu0 %786  ;;  %1211 = vmatpush.msra.mxu3 %v254_v35  ;;  %1156 = vmatmul.msk.f32.vlgmr.msra.gmra.mxu2 %vm261_vm6, %v1154_v36 }
  0xa3   : > { %v789_v21 = vsel %vm788_vm5, %v785_v8, %v787_v18  ;;  %v798_v27 = vmul.f32 %v787_v18, %v1454_v13  ;;  %v795_v32 = vmul.f32 %v787_v18, %v1459_v15  ;;  %1158 = vmatmul.msk.f32.vlgmr.msra.gmra.mxu3 %vm261_vm6, %v1154_v36 }
  0xa4   : > { %v797_v24 = vmul.f32 %v789_v21, %v1445_v10  ;;  %v794_v31 = vmul.f32 %v789_v21, %v1457_v14 }
  0xa5   : > { %v1317_v29 = vpack.i.bf16 %v793_v22, %v798_v27 }
  0xa6   : > { %v1332_v28 = vpack.i.bf16 %v797_v24, %v796_v23  ;;  %v1347_v33 = vpack.i.bf16 %v795_v32, %v794_v31 }
  0xa7   : > { %1303 = vrot.lane.b32.xlu2 %v1302_v3, %s1391_s6  ;;  %v230_v3 = vld [vmem:[%s1625_s2 + $0x8] sm:$0xff] }
  0xa8   : > { %1293 = vrot.lane.b32.xlu0 %v1449_v11, %s1392_s7  ;;  %1298 = vrot.lane.b32.xlu1 %v1463_v16, %s1392_s7 }
  0xaf   : > { %1308 = vrot.lane.b32.xlu2 %v1467_v17, %s1392_s7  ;;  %s197_s7 = scalar_lea.vmem %s1627_s4, %s1207_s30 }
  0xb0   : > { %1323 = vrot.lane.b32.xlu0 %v1322_v19, %s1393_s8  ;;  %1313 = vrot.lane.b32.xlu1 %v1312_v20, %s1393_s8 }
  0xb7   : > { %1328 = vrot.lane.b32.xlu2 %v1327_v30, %s1393_s8  ;;  %v1164_v30 = vld [vmem:[%s1625_s2 + $0x28] sm:$0xff] }
  0xb8   : > { %1333 = vrot.lane.b32.xlu0 %v1332_v28, %s1394_s9  ;;  %1318 = vrot.lane.b32.xlu1 %v1317_v29, %s1394_s9  ;;  %v1169_v29 = vld [vmem:[%s1625_s2 + $0x30] sm:$0xff] }
  0xbf   : > { %1348 = vrot.lane.b32.xlu2 %v1347_v33, %s1394_s9 }
  0xc0   : > { %1338 = vrot.lane.b32.xlu0 %v1449_v11, %s1395_s10  ;;  %1343 = vrot.lane.b32.xlu1 %v1463_v16, %s1395_s10  ;;  %v1153_v16 = vld [vmem:[%s1625_s2 + $0x10] sm:$0xff] }
  0xc1   : > { %1155 = vmatmul.msk.f32.vlgmr.msra.gmra.mxu0 %vm261_vm6, %v1153_v16  ;;  %1157 = vmatmul.msk.f32.vlgmr.msra.gmra.mxu1 %vm261_vm6, %v1153_v16 }
  0xc7   : > { %1353 = vrot.lane.b32.xlu2 %v1467_v17, %s1395_s10  ;;  %v966_v17 = vpop.permute.xlu1 %965 }
  0xc8   : > { %v974_v38 = vmul.f32 %v966_v17, %v1452_v12  ;;  %v977_v39 = vmul.f32 %v966_v17, %v1443_v9 }
  0xe9   : > { %v1254_v11 = vpop.permute.xlu2 %1253 }
  0xea   : > { %v1255_v49 = vunpack.i.l.bf16 %v1254_v11 }
  0xf1   : > { %v1259_v37 = vpop.permute.xlu2 %1258 }
  0xf2   : > { %v1260_v58 = vunpack.i.l.bf16 %v1259_v37  ;;  %v1261_v0 = vunpack.i.h.bf16 %v1259_v37 }
  0xf9   : > { %v968_v40 = vpop.permute.xlu2 %967 }
  0xfa   : > { %v970_v41 = vsel %vm969_vm7, %v966_v17, %v968_v40  ;;  %v976_v42 = vmul.f32 %v968_v40, %v1459_v15  ;;  %v979_v43 = vmul.f32 %v968_v40, %v1454_v13  ;;  %v1256_v13 = vunpack.i.h.bf16 %v1254_v11 }
  0xfb   : > { %v975_v44 = vmul.f32 %v970_v41, %v1457_v14  ;;  %v978_v45 = vmul.f32 %v970_v41, %v1445_v10  ;;  %v229_v10 = vld [vmem:[%s1625_s2] sm:$0xff]  ;;  %v1170_v41 = vld [vmem:[%s1625_s2 + $0x38] sm:$0xff] }
  0xfc   : > { %v1362_v46 = vpack.i.bf16 %v974_v38, %v979_v43 }
  0xfd   : > { %v1357_v47 = vpack.i.bf16 %v978_v45, %v977_v39  ;;  %v1367_v48 = vpack.i.bf16 %v976_v42, %v975_v44  ;;  %v1175_v42 = vld [vmem:[%s1625_s2 + $0x40] sm:$0xff] }
  0xfe   : > { %1363 = vrot.lane.b32.xlu1 %v1362_v46, %s1396_s17 }
  0xff   : > { %1358 = vrot.lane.b32.xlu0 %v1357_v47, %s1396_s17  ;;  %1368 = vrot.lane.b32.xlu2 %v1367_v48, %s1396_s17 }
 0x101   : > { %v1304_v54 = vpop.permute.xlu2 %1303 }
 0x102   : > { %v1269_v12 = vpop.permute.xlu0 %1268  ;;  %v1264_v9 = vpop.permute.xlu1 %1263  ;;  %v1306_v18 = vunpack.i.h.bf16 %v1304_v54  ;;  %v1305_v19 = vunpack.i.l.bf16 %v1304_v54 }
 0x103   : > { %v1266_v50 = vunpack.i.h.bf16 %v1264_v9  ;;  %v1265_v51 = vunpack.i.l.bf16 %v1264_v9  ;;  %v1271_v15 = vunpack.i.h.bf16 %v1269_v12  ;;  %v1270_v52 = vunpack.i.l.bf16 %v1269_v12 }
 0x104   : > { %v540_v28 = vsel %vm538_vm10, %v1305_v19, %v1306_v18 }
 0x105   : > { %v335_v53 = vsel %vm332_vm8, %v1265_v51, %v1266_v50  ;;  %v336_v14 = vsel %vm332_vm8, %v1266_v50, %v1255_v49  ;;  %v333_v55 = vsel %vm332_vm8, %v1256_v13, %v1270_v52  ;;  %v334_v56 = vsel %vm332_vm8, %v1270_v52, %v1271_v15  ;;  %v1181_v13 = vld [vmem:[%s1625_s2 + $0x50] sm:$0xff] }
 0x106   : > { %361 = vmatpush.msrb.mxu2 %v335_v53  ;;  %384 = vmatpush.msrb.mxu3 %v336_v14  ;;  %v1176_v53 = vld [vmem:[%s1625_s2 + $0x48] sm:$0xff] }
 0x108   : > { %362 = vmatpush.msrb.mxu2 %v333_v55  ;;  %385 = vmatpush.msrb.mxu3 %v334_v56 }
 0x109   : > { %1159 = vmatmul.msk.f32.vlgmr.msrb.gmra.mxu2 %vm261_vm6, %v229_v10  ;;  %1161 = vmatmul.msk.f32.vlgmr.msrb.gmra.mxu3 %vm261_vm6, %v229_v10  ;;  %v1309_v7 = vpop.permute.xlu2 %1308 }
 0x10a   : > { %v1284_v57 = vpop.permute.xlu0 %1283  ;;  %v1274_v59 = vpop.permute.xlu1 %1273  ;;  %v1311_v32 = vunpack.i.h.bf16 %v1309_v7  ;;  %v1310_v33 = vunpack.i.l.bf16 %v1309_v7 }
 0x10b   : > { %v1276_v60 = vunpack.i.h.bf16 %v1274_v59  ;;  %v1275_v61 = vunpack.i.l.bf16 %v1274_v59  ;;  %v1286_v62 = vunpack.i.h.bf16 %v1284_v57  ;;  %v1285_v63 = vunpack.i.l.bf16 %v1284_v57 }
 0x10c   : > { %v620_v40 = vsel %vm618_vm11, %v1310_v33, %v1311_v32 }
 0x10d   : > { %v440_v1 = vsel %vm437_vm9, %v1275_v61, %v1276_v60  ;;  %v441_v2 = vsel %vm437_vm9, %v1276_v60, %v1260_v58  ;;  %v438_v4 = vsel %vm437_vm9, %v1261_v0, %v1285_v63  ;;  %v439_v5 = vsel %vm437_vm9, %v1285_v63, %v1286_v62  ;;  %v1182_v0 = vld [vmem:[%s1625_s2 + $0x58] sm:$0xff] }
 0x10e   : > { %466 = vmatpush.msrb.mxu0 %v440_v1  ;;  %489 = vmatpush.msrb.mxu1 %v441_v2  ;;  %v1187_v2 = vld [vmem:[%s1625_s2 + $0x60] sm:$0xff] }
 0x110   : > { %467 = vmatpush.msrb.mxu0 %v438_v4  ;;  %490 = vmatpush.msrb.mxu1 %v439_v5 }
 0x111   : > { %1160 = vmatmul.msk.f32.gmra.mxu2 %vm261_vm6, %v230_v3  ;;  %1162 = vmatmul.msk.f32.gmra.mxu3 %vm261_vm6, %v230_v3  ;;  %v1329_v11 = vpop.permute.xlu2 %1328 }
 0x112   : > { %v1289_v8 = vpop.permute.xlu0 %1288  ;;  %v1279_v22 = vpop.permute.xlu1 %1278  ;;  %1165 = vmatmul.msk.f32.vlgmr.msrb.gmra.mxu0 %vm261_vm6, %v1163_v6  ;;  %1167 = vmatmul.msk.f32.vlgmr.msrb.gmra.mxu1 %vm261_vm6, %v1163_v6  ;;  %v1331_v44 = vunpack.i.h.bf16 %v1329_v11  ;;  %v1330_v45 = vunpack.i.l.bf16 %v1329_v11 }
 0x113   : > { %v1291_v20 = vunpack.i.h.bf16 %v1289_v8  ;;  %v1290_v21 = vunpack.i.l.bf16 %v1289_v8  ;;  %v1281_v23 = vunpack.i.h.bf16 %v1279_v22  ;;  %v1280_v24 = vunpack.i.l.bf16 %v1279_v22 }
 0x114   : > { %v721_v52 = vsel %vm719_vm12, %v1330_v45, %v1331_v44 }
 0x115   : > { %v541_v25 = vsel %vm538_vm10, %v1290_v21, %v1291_v20  ;;  %v542_v26 = vsel %vm538_vm10, %v1291_v20, %v1280_v24  ;;  %v539_v27 = vsel %vm538_vm10, %v1281_v23, %v1305_v19  ;;  %v1193_v24 = vld [vmem:[%s1625_s2 + $0x70] sm:$0xff] }
 0x116   : > { %567 = vmatpush.msra.mxu2 %v541_v25  ;;  %590 = vmatpush.msra.mxu3 %v542_v26  ;;  %v1188_v25 = vld [vmem:[%s1625_s2 + $0x68] sm:$0xff]  ;;  %v1194_v26 = vld [vmem:[%s1625_s2 + $0x78] sm:$0xff] }
 0x118   : > { %568 = vmatpush.msra.mxu2 %v539_v27  ;;  %591 = vmatpush.msra.mxu3 %v540_v28  ;;  %v1066_v27 = vld [vmem:[%s1626_s3] sm:$0xff]  ;;  %v1067_v28 = vld [vmem:[%s1626_s3 + $0x8] sm:$0xff] }
 0x119   : > { %1171 = vmatmul.msk.f32.vlgmr.msra.gmra.mxu2 %vm261_vm6, %v1169_v29  ;;  %1173 = vmatmul.msk.f32.vlgmr.msra.gmra.mxu3 %vm261_vm6, %v1169_v29  ;;  %v1349_v50 = vpop.permute.xlu2 %1348  ;;  %v1397_v29 = vmov 0  }
 0x11a   : > { %v1294_v31 = vpop.permute.xlu0 %1293  ;;  %v1299_v36 = vpop.permute.xlu1 %1298  ;;  %1166 = vmatmul.msk.f32.gmra.mxu0 %vm261_vm6, %v1164_v30  ;;  %1168 = vmatmul.msk.f32.gmra.mxu1 %vm261_vm6, %v1164_v30  ;;  %v1351_v10 = vunpack.i.h.bf16 %v1349_v50  ;;  %v1350_v54 = vunpack.i.l.bf16 %v1349_v50 }
 0x11b   : > { %v1296_v34 = vunpack.i.h.bf16 %v1294_v31  ;;  %v1295_v35 = vunpack.i.l.bf16 %v1294_v31  ;;  %v1301_v37 = vunpack.i.h.bf16 %v1299_v36  ;;  %v1300_v16 = vunpack.i.l.bf16 %v1299_v36  ;;  %1372 = vset.pattern.permute.xlu0 %v1397_v29  ;;  %1373 = vset.pattern.permute.xlu1 %v1397_v29 }
 0x11c   : > { %v822_v63 = vsel %vm820_vm13, %v1350_v54, %v1351_v10  ;;  %1070 = vperm.xlu0 %1372, %v1066_v27   ;;  %1075 = vperm.xlu1 %1373, %v1067_v28  }
 0x11d   : > { %v621_v17 = vsel %vm618_vm11, %v1295_v35, %v1296_v34  ;;  %v622_v38 = vsel %vm618_vm11, %v1296_v34, %v1300_v16  ;;  %v619_v39 = vsel %vm618_vm11, %v1301_v37, %v1310_v33 }
 0x11e   : > { %647 = vmatpush.msra.mxu0 %v621_v17  ;;  %670 = vmatpush.msra.mxu1 %v622_v38  ;;  %v1199_v38 = vld [vmem:[%s1625_s2 + $0x80] sm:$0xff] }
 0x120   : > { %648 = vmatpush.msra.mxu0 %v619_v39  ;;  %671 = vmatpush.msra.mxu1 %v620_v40 }
 0x121   : > { %1172 = vmatmul.msk.f32.gmra.mxu2 %vm261_vm6, %v1170_v41  ;;  %1174 = vmatmul.msk.f32.gmra.mxu3 %vm261_vm6, %v1170_v41  ;;  %v1354_v1 = vpop.permute.xlu2 %1353  ;;  %v1200_v41 = vld [vmem:[%s1625_s2 + $0x88] sm:$0xff] }
 0x122   : > { %v1324_v43 = vpop.permute.xlu0 %1323  ;;  %v1314_v48 = vpop.permute.xlu1 %1313  ;;  %1177 = vmatmul.msk.f32.vlgmr.msra.gmra.mxu0 %vm261_vm6, %v1175_v42  ;;  %1179 = vmatmul.msk.f32.vlgmr.msra.gmra.mxu1 %vm261_vm6, %v1175_v42  ;;  %v1356_v4 = vunpack.i.h.bf16 %v1354_v1  ;;  %v1355_v5 = vunpack.i.l.bf16 %v1354_v1 }
 0x123   : > { %v1326_v46 = vunpack.i.h.bf16 %v1324_v43  ;;  %v1325_v47 = vunpack.i.l.bf16 %v1324_v43  ;;  %v1316_v12 = vunpack.i.h.bf16 %v1314_v48  ;;  %v1315_v49 = vunpack.i.l.bf16 %v1314_v48 }
 0x124   : > { %v902_v23 = vsel %vm900_vm14, %v1355_v5, %v1356_v4 }
 0x125   : > { %v722_v9 = vsel %vm719_vm12, %v1325_v47, %v1326_v46  ;;  %v723_v51 = vsel %vm719_vm12, %v1326_v46, %v1315_v49  ;;  %v720_v15 = vsel %vm719_vm12, %v1316_v12, %v1330_v45  ;;  %v288_v42 = vpop.f32.mrf.mxu2 }
 0x126   : > { %748 = vmatpush.msrb.mxu2 %v722_v9  ;;  %771 = vmatpush.msrb.mxu3 %v723_v51  ;;  %v311_v43 = vpop.f32.mrf.mxu3 }
 0x128   : > { %749 = vmatpush.msrb.mxu2 %v720_v15  ;;  %772 = vmatpush.msrb.mxu3 %v721_v52 }
 0x129   : > { %1183 = vmatmul.msk.f32.vlgmr.msrb.gmra.mxu2 %vm261_vm6, %v1181_v13  ;;  %1185 = vmatmul.msk.f32.vlgmr.msrb.gmra.mxu3 %vm261_vm6, %v1181_v13 }
 0x12a   : > { %v1334_v14 = vpop.permute.xlu0 %1333  ;;  %v1319_v57 = vpop.permute.xlu1 %1318  ;;  %1178 = vmatmul.msk.f32.gmra.mxu0 %vm261_vm6, %v1176_v53  ;;  %1180 = vmatmul.msk.f32.gmra.mxu1 %vm261_vm6, %v1176_v53 }
 0x12b   : > { %v1336_v55 = vunpack.i.h.bf16 %v1334_v14  ;;  %v1335_v56 = vunpack.i.l.bf16 %v1334_v14  ;;  %v1321_v58 = vunpack.i.h.bf16 %v1319_v57  ;;  %v1320_v59 = vunpack.i.l.bf16 %v1319_v57 }
 0x12d   : > { %v823_v60 = vsel %vm820_vm13, %v1335_v56, %v1336_v55  ;;  %v824_v61 = vsel %vm820_vm13, %v1336_v55, %v1320_v59  ;;  %v821_v62 = vsel %vm820_vm13, %v1321_v58, %v1350_v54 }
 0x12e   : > { %849 = vmatpush.msrb.mxu0 %v823_v60  ;;  %872 = vmatpush.msrb.mxu1 %v824_v61 }
 0x130   : > { %850 = vmatpush.msrb.mxu0 %v821_v62  ;;  %873 = vmatpush.msrb.mxu1 %v822_v63 }
 0x131   : > { %1184 = vmatmul.msk.f32.gmra.mxu2 %vm261_vm6, %v1182_v0  ;;  %1186 = vmatmul.msk.f32.gmra.mxu3 %vm261_vm6, %v1182_v0 }
 0x132   : > { %v1339_v3 = vpop.permute.xlu0 %1338  ;;  %v1344_v8 = vpop.permute.xlu1 %1343  ;;  %1189 = vmatmul.msk.f32.vlgmr.msrb.gmra.mxu0 %vm261_vm6, %v1187_v2  ;;  %1191 = vmatmul.msk.f32.vlgmr.msrb.gmra.mxu1 %vm261_vm6, %v1187_v2 }
 0x133   : > { %v1341_v6 = vunpack.i.h.bf16 %v1339_v3  ;;  %v1340_v7 = vunpack.i.l.bf16 %v1339_v3  ;;  %v1346_v18 = vunpack.i.h.bf16 %v1344_v8  ;;  %v1345_v19 = vunpack.i.l.bf16 %v1344_v8 }
 0x135   : > { %v903_v20 = vsel %vm900_vm14, %v1340_v7, %v1341_v6  ;;  %v904_v21 = vsel %vm900_vm14, %v1341_v6, %v1345_v19  ;;  %v901_v22 = vsel %vm900_vm14, %v1346_v18, %v1355_v5 }
 0x136   : > { %929 = vmatpush.msra.mxu2 %v903_v20  ;;  %952 = vmatpush.msra.mxu3 %v904_v21 }
 0x138   : > { %930 = vmatpush.msra.mxu2 %v901_v22  ;;  %953 = vmatpush.msra.mxu3 %v902_v23 }
 0x139   : > { %1195 = vmatmul.msk.f32.vlgmr.msra.gmra.mxu2 %vm261_vm6, %v1193_v24  ;;  %1197 = vmatmul.msk.f32.vlgmr.msra.gmra.mxu3 %vm261_vm6, %v1193_v24 }
 0x13a   : > { %1190 = vmatmul.msk.f32.gmra.mxu0 %vm261_vm6, %v1188_v25  ;;  %1192 = vmatmul.msk.f32.gmra.mxu1 %vm261_vm6, %v1188_v25 }
 0x13e   : > { %v285_v44 = vpop.f32.mrf.mxu0  ;;  %v308_v45 = vpop.f32.mrf.mxu1 }
 0x141   : > { %1196 = vmatmul.msk.f32.gmra.mxu2 %vm261_vm6, %v1194_v26  ;;  %1198 = vmatmul.msk.f32.gmra.mxu3 %vm261_vm6, %v1194_v26 }
 0x159   : > { %v1369_v30 = vpop.permute.xlu2 %1368 }
 0x15a   : > { %v1371_v32 = vunpack.i.h.bf16 %v1369_v30  ;;  %v1370_v35 = vunpack.i.l.bf16 %v1369_v30 }
 0x15c   : > { %v1003_v40 = vsel %vm1001_vm15, %v1370_v35, %v1371_v32 }
 0x170   : > { %v1364_v31 = vpop.permute.xlu1 %1363 }
 0x171   : > { %v1365_v33 = vunpack.i.l.bf16 %v1364_v31  ;;  %v1359_v34 = vpop.permute.xlu0 %1358  ;;  %v1366_v36 = vunpack.i.h.bf16 %v1364_v31 }
 0x172   : > { %v1361_v11 = vunpack.i.h.bf16 %v1359_v34  ;;  %v1360_v37 = vunpack.i.l.bf16 %v1359_v34 }
 0x173   : > { %v1002_v39 = vsel %vm1001_vm15, %v1366_v36, %v1370_v35 }
 0x174   : > { %v1004_v16 = vsel %vm1001_vm15, %v1360_v37, %v1361_v11  ;;  %v1005_v17 = vsel %vm1001_vm15, %v1361_v11, %v1365_v33 }
 0x175   : > { %1030 = vmatpush.msra.mxu0 %v1004_v16  ;;  %1053 = vmatpush.msra.mxu1 %v1005_v17 }
 0x177   : > { %1031 = vmatpush.msra.mxu0 %v1002_v39  ;;  %1054 = vmatpush.msra.mxu1 %v1003_v40 }
 0x178   : > { %1201 = vmatmul.msk.f32.vlgmr.msra.gmra.mxu0 %vm261_vm6, %v1199_v38  ;;  %1203 = vmatmul.msk.f32.vlgmr.msra.gmra.mxu1 %vm261_vm6, %v1199_v38 }
 0x180   : > { %1202 = vmatmul.msk.f32.gmra.mxu0 %vm261_vm6, %v1200_v41  ;;  %1204 = vmatmul.msk.f32.gmra.mxu1 %vm261_vm6, %v1200_v41 }
 0x18c   : > { %v364_v46 = vpop.f32.mrf.mxu2  ;;  %v387_v47 = vpop.f32.mrf.mxu3 }
 0x18d   : > { %v365_v58 = vadd.f32 %v364_v46, %v285_v44  ;;  %v388_v59 = vadd.f32 %v387_v47, %v308_v45 }
 0x18e   : > { %v1071_v35 = vpop.permute.xlu0 %1070 }
 0x18f   : > { %v469_v48 = vpop.f32.mrf.mxu0  ;;  %v492_v12 = vpop.f32.mrf.mxu1 }
 0x190   : > { %v498_v60 = vadd.f32 %v469_v48, %v365_v58  ;;  %v499_v61 = vadd.f32 %v492_v12, %v388_v59  ;;  %v1076_v48 = vpop.permute.xlu1 %1075 }
 0x194   : > { %v367_v49 = vpop.f32.mrf.mxu2  ;;  %v390_v9 = vpop.f32.mrf.mxu3 }
 0x195   : > { %v368_v0 = vadd.f32 %v367_v49, %v288_v42  ;;  %v391_v1 = vadd.f32 %v390_v9, %v311_v43 }
 0x197   : > { %v472_v50 = vpop.f32.mrf.mxu0  ;;  %v495_v51 = vpop.f32.mrf.mxu1 }
 0x198   : > { %v500_v6 = vadd.f32 %v472_v50, %v368_v0  ;;  %v501_v7 = vadd.f32 %v495_v51, %v391_v1 }
 0x19c   : > { %v570_v15 = vpop.f32.mrf.mxu2  ;;  %v593_v52 = vpop.f32.mrf.mxu3 }
 0x19d   : > { %v599_v2 = vadd.f32 %v570_v15, %v498_v60  ;;  %v600_v3 = vadd.f32 %v593_v52, %v499_v61 }
 0x19f   : > { %v650_v13 = vpop.f32.mrf.mxu0  ;;  %v673_v53 = vpop.f32.mrf.mxu1 }
 0x1a0   : > { %v679_v8 = vadd.f32 %v650_v13, %v599_v2  ;;  %v680_v18 = vadd.f32 %v673_v53, %v600_v3 }
 0x1a4   : > { %v573_v14 = vpop.f32.mrf.mxu2  ;;  %v596_v10 = vpop.f32.mrf.mxu3 }
 0x1a5   : > { %v601_v19 = vadd.f32 %v573_v14, %v500_v6  ;;  %v602_v20 = vadd.f32 %v596_v10, %v501_v7 }
 0x1a7   : > { %v653_v54 = vpop.f32.mrf.mxu0  ;;  %v676_v55 = vpop.f32.mrf.mxu1 }
 0x1a8   : > { %v681_v27 = vadd.f32 %v653_v54, %v601_v19  ;;  %v682_v28 = vadd.f32 %v676_v55, %v602_v20 }
 0x1ac   : > { %v751_v56 = vpop.f32.mrf.mxu2  ;;  %v774_v57 = vpop.f32.mrf.mxu3 }
 0x1ad   : > { %v780_v21 = vadd.f32 %v751_v56, %v679_v8  ;;  %v781_v22 = vadd.f32 %v774_v57, %v680_v18 }
 0x1af   : > { %v852_v62 = vpop.f32.mrf.mxu0  ;;  %v875_v63 = vpop.f32.mrf.mxu1 }
 0x1b0   : > { %v881_v29 = vadd.f32 %v852_v62, %v780_v21  ;;  %v882_v30 = vadd.f32 %v875_v63, %v781_v22 }
 0x1b4   : > { %v754_v4 = vpop.f32.mrf.mxu2  ;;  %v777_v5 = vpop.f32.mrf.mxu3 }
 0x1b5   : > { %v782_v31 = vadd.f32 %v754_v4, %v681_v27  ;;  %v783_v32 = vadd.f32 %v777_v5, %v682_v28 }
 0x1b7   : > { %v855_v23 = vpop.f32.mrf.mxu0  ;;  %v878_v24 = vpop.f32.mrf.mxu1 }
 0x1b8   : > { %v883_v17 = vadd.f32 %v855_v23, %v782_v31  ;;  %v884_v38 = vadd.f32 %v878_v24, %v783_v32 }
 0x1bc   : > { %v932_v25 = vpop.f32.mrf.mxu2  ;;  %v955_v26 = vpop.f32.mrf.mxu3 }
 0x1bd   : > { %v961_v33 = vadd.f32 %v932_v25, %v881_v29  ;;  %v962_v34 = vadd.f32 %v955_v26, %v882_v30 }
 0x1c4   : > { %v935_v41 = vpop.f32.mrf.mxu2  ;;  %v958_v42 = vpop.f32.mrf.mxu3 }
 0x1c5   : > { %v963_v45 = vadd.f32 %v935_v41, %v883_v17  ;;  %v964_v46 = vadd.f32 %v958_v42, %v884_v38 }
 0x1f5   : > { %v1033_v36 = vpop.f32.mrf.mxu0  ;;  %v1056_v11 = vpop.f32.mrf.mxu1 }
 0x1f6   : > { %v1062_v37 = vadd.f32 %v1033_v36, %v961_v33  ;;  %v1063_v16 = vadd.f32 %v1056_v11, %v962_v34 }
 0x1f8   : > { %v1078_v39 = vadd.f32 %v1071_v35, %v1062_v37  ;;  %v1079_v40 = vadd.f32 %v1071_v35, %v1063_v16 }
 0x1fa   : > { %v1082_v43 = vmax.f32 %v1078_v39, 0.0  ;;  %v1083_v44 = vmax.f32 %v1079_v40, 0.0 }
 0x1fc   : > { %v1086_v47 = vpack.c.bf16 %v1083_v44, %v1082_v43 }
 0x1fd   : > { %v1036_v12 = vpop.f32.mrf.mxu0  ;;  %v1059_v49 = vpop.f32.mrf.mxu1 }
 0x1fe   : > { %1088 = vst [vmem:[%s197_s7] sm:$0xff] %v1086_v47  ;;  %v1064_v9 = vadd.f32 %v1036_v12, %v963_v45  ;;  %v1065_v50 = vadd.f32 %v1059_v49, %v964_v46 }
 0x200   : > { %v1080_v51 = vadd.f32 %v1076_v48, %v1064_v9  ;;  %v1081_v15 = vadd.f32 %v1076_v48, %v1065_v50 }
 0x202   : > { %v1084_v52 = vmax.f32 %v1080_v51, 0.0  ;;  %v1085_v13 = vmax.f32 %v1081_v15, 0.0 }
 0x204   : > { %v1087_v53 = vpack.c.bf16 %v1085_v13, %v1084_v52 }
 0x206   : > { %1089 = vst [vmem:[%s197_s7 + $0x8] sm:$0xff] %v1087_v53 }
 0x207 PF: > { %s14_s15 = sadd.s32 1, %s1380_s15  }
 0x208   : > { %p11_p4 = scmp.ge.s32.totalorder %s14_s15, 4  }
 0x20a   :  { %13 = sbr.rel (!%p11_p4) target bundleno = 1 (0x1), region = 74 }

</bundles_post_ra>
